<compile_context>
chip_gen: v7x
topology: tpu7x:2x2x1
jax: 0.10.0
libtpu: 0.0.40
codegen_flags: <defaults>
</compile_context>

<pallas_src>
import jax
import jax.numpy as jnp
from jax.experimental import pallas as pl
from jax.experimental.pallas import tpu as pltpu

C_FEAT = 960   # MobileViT final feature channels (matches W: 960 x 4)
OUT_DIM = 4


def encoder_head_kernel(x_ref, w_ref, o_ref):
    """Fused AdaptiveAvgPool2d(1) + matmul for one tile of TB batch elements.

    x_ref: (TB, HW, C)   features; spatial on sublanes, channels on lanes (VMEM)
    w_ref: (C, OUT_DIM)  projection weight, fully resident (VMEM)
    o_ref: (TB, OUT_DIM) per-tile output block
    """
    # Upcast (supports bf16 feature ingestion to halve HBM traffic).
    x = x_ref[...].astype(jnp.float32)
    # AdaptiveAvgPool2d(1): mean over flattened spatial -> (TB, C).
    # C stays on the lane axis, so the result feeds the MXU without a transpose.
    pooled = jnp.mean(x, axis=1)
    # torch.mm(x, W): (TB, C) @ (C, 4) -> (TB, 4)
    o_ref[...] = jnp.dot(
        pooled, w_ref[...].astype(jnp.float32),
        preferred_element_type=jnp.float32,
    ).astype(o_ref.dtype)


def encoder_head(feats, W, *, batch_tile=8):
    """feats: (B, C, H, W) NCHW backbone features; W: (C, 4). Returns (B, 4)."""
    B, C, H, Wsp = feats.shape
    hw = H * Wsp

    # Layout: (B, C, H, W) -> (B, HW, C). Channels land on the lane axis so the
    # cross-sublane spatial reduce is MXU-ready and loads are lane-dense.
    x = feats.reshape(B, C, hw).transpose(0, 2, 1)

    # Batch tile: amortize the ~0.35us per-step pipeline overhead and give the
    # MXU an M=TB operand. TB=8 keeps the double-buffered feature tile well
    # under the v7x 32 MiB scoped-VMEM default (and is a multiple of 8 so the
    # per-tile output block satisfies the sublane constraint when B > TB).
    tb = B if B <= batch_tile else batch_tile
    grid = (pl.cdiv(B, tb),)

    itemsize = jnp.dtype(x.dtype).itemsize
    cost = pl.CostEstimate(
        flops=2 * B * C * (hw + OUT_DIM),
        transcendentals=0,
        bytes_accessed=B * C * hw * itemsize + C * OUT_DIM * 4 + B * OUT_DIM * 4,
    )

    return pl.pallas_call(
        encoder_head_kernel,
        out_shape=jax.ShapeDtypeStruct((B, OUT_DIM), jnp.float32),
        grid_spec=pltpu.PrefetchScalarGridSpec(
            num_scalar_prefetch=0,
            grid=grid,
            in_specs=[
                pl.BlockSpec((tb, hw, C), lambda i: (i, 0, 0)),
                pl.BlockSpec((C, OUT_DIM), lambda i: (0, 0)),
            ],
            # Per-tile (non-resident) output block -> batch axis can be
            # "parallel" and shard across both v7x TensorCores without racing.
            out_specs=pl.BlockSpec((tb, OUT_DIM), lambda i: (i, 0)),
        ),
        compiler_params=pltpu.CompilerParams(
            dimension_semantics=("parallel",),
            vmem_limit_bytes=64 * 1024 * 1024,
        ),
        cost_estimate=cost,
    )(x, W)


def standin_backbone(img, stem_w):
    # TODO(synk): real backbone is `torch.load('model_structure.pt')` (a MobileViT);
    # it cannot be reproduced from the module source, so use a deterministic
    # 1x1-conv + ReLU stand-in that produces (B, 960, H, W) features.
    feats = jnp.einsum('bchw,cf->bfhw', img, stem_w)
    return jax.nn.relu(feats)


if __name__ == "__main__":
    key = jax.random.PRNGKey(0)
    k_img, k_stem, k_w = jax.random.split(key, 3)

    B, C_IN, H, Wsp = 2, 3, 16, 16
    img = jax.random.normal(k_img, (B, C_IN, H, Wsp), jnp.float32)

    # Stand-in stem weights (deterministic).
    stem_w = jax.random.normal(k_stem, (C_IN, C_FEAT), jnp.float32) * 0.1

    # nn.init.xavier_normal_(W, gain=1): std = sqrt(2 / (fan_in + fan_out))
    xavier_std = jnp.sqrt(2.0 / (C_FEAT + OUT_DIM))
    W = jax.random.normal(k_w, (C_FEAT, OUT_DIM), jnp.float32) * xavier_std

    feats = standin_backbone(img, stem_w)            # (B, 960, 16, 16)
    out = encoder_head(feats, W)                     # (B, 4)
    out = jax.block_until_ready(out)

    # Reference check of the Pallas-implemented head (pool + squeeze + mm).
    ref = feats.mean(axis=(2, 3)) @ W
    assert out.shape == (B, OUT_DIM)
    assert jnp.allclose(out, ref, rtol=2e-2, atol=2e-2), (out, ref)

    print("KERNEL_OK")
</pallas_src>

<mosaic_0001>
module attributes {stable_mosaic.version = 11 : i64} {
  func.func @encoder_head_kernel(%arg0: i32, %arg1: memref<2x256x960xf32, #tpu.memory_space<vmem>>, %arg2: memref<960x4xf32, #tpu.memory_space<vmem>>, %arg3: memref<2x4xf32, #tpu.memory_space<vmem>>) attributes {dimension_semantics = [#tpu.dimension_semantics<parallel>], iteration_bounds = array<i64: 1>, scalar_prefetch = 0 : i64, scratch_operands = 0 : i64, tpu.core_type = #tpu.core_type<tc>, window_params = [{transform_indices = @transform_0, window_bounds = array<i64: 2, 256, 960>}, {pipeline_mode = #tpu.pipeline_mode<synchronous>, transform_indices = @transform_1, window_bounds = array<i64: 960, 4>}, {transform_indices = @transform_2, window_bounds = array<i64: 2, 4>}]} {
    %c0 = arith.constant 0 : index
    %c0_0 = arith.constant 0 : index
    %c0_1 = arith.constant 0 : index
    %0 = vector.load %arg1[%c0, %c0_0, %c0_1] : memref<2x256x960xf32, #tpu.memory_space<vmem>>, vector<2x256x960xf32>
    %cst = arith.constant dense<0.000000e+00> : vector<2x960xf32>
    %1 = vector.multi_reduction <add>, %0, %cst [1] : vector<2x256x960xf32> to vector<2x960xf32>
    %cst_2 = arith.constant 2.560000e+02 : f32
    %2 = vector.broadcast %cst_2 : f32 to vector<2x960xf32>
    %3 = arith.divf %1, %2 : vector<2x960xf32>
    %c0_3 = arith.constant 0 : index
    %c0_4 = arith.constant 0 : index
    %4 = vector.load %arg2[%c0_3, %c0_4] : memref<960x4xf32, #tpu.memory_space<vmem>>, vector<960x4xf32>
    %cst_5 = arith.constant dense<0.000000e+00> : vector<2x4xf32>
    %5 = tpu.matmul %3, %4, %cst_5 {dimension_numbers = #tpu.dot_dimension_numbers<[1], [0], [0], [1], [0, 0, 1, 1], [], []>} : vector<2x960xf32>, vector<960x4xf32>, vector<2x4xf32> -> vector<2x4xf32>
    %c0_6 = arith.constant 0 : index
    %c0_7 = arith.constant 0 : index
    %6 = vector.load %arg3[%c0_6, %c0_7] : memref<2x4xf32, #tpu.memory_space<vmem>>, vector<2x4xf32>
    tpu.vector_store %arg3[%c0_6, %c0_7], %5 {strides = array<i32>} : memref<2x4xf32, #tpu.memory_space<vmem>>, vector<2x4xf32>,
    return
  }
  func.func @transform_0(%arg0: i32) -> (i32, i32, i32) {
    %c0_i32 = arith.constant 0 : i32
    %c0_i32_0 = arith.constant 0 : i32
    %c0_i32_1 = arith.constant 0 : i32
    return %arg0, %c0_i32, %c0_i32_0 : i32, i32, i32
  }
  func.func @transform_1(%arg0: i32) -> (i32, i32) {
    %c0_i32 = arith.constant 0 : i32
    %c0_i32_0 = arith.constant 0 : i32
    %c0_i32_1 = arith.constant 0 : i32
    return %c0_i32, %c0_i32_0 : i32, i32
  }
  func.func @transform_2(%arg0: i32) -> (i32, i32) {
    %c0_i32 = arith.constant 0 : i32
    %c0_i32_0 = arith.constant 0 : i32
    return %arg0, %c0_i32 : i32, i32
  }
}

</mosaic_0001>

<bundles_post_ra>
// kernel: tpu_custom_call.1
= control target key start
LH: loop header
LB: loop body
LE: loop exit
PB: predicated region body
PF: predicated region fallthrough
CT: control target
= control target key end

     0   :  { %7 = vsyncpa [#allocation3], 0  ;;  %s2239_s0 = inlined_call_operand.hbm [shape: f32[2,256,960], index: 0, kind: input, shape index: {}]   ;;  %s2240_s1 = inlined_call_operand.hbm [shape: f32[960,4], index: 1, kind: input, shape index: {}]   ;;  %s2241_s2 = inlined_call_operand.hbm [shape: f32[2,4], index: 2, kind: output, shape index: {}]  }
   0x1   :  { %8 = vsyncpa [#allocation6], 0 }
   0x2   :  { %9 = vsyncpa [#allocation4], 0  ;;  %s1996_s9 = smov [#allocation2]   ;;  %s1924_s13 = scalar_lea.hbm %s2239_s0, 65536 }
   0x3   :  { %s15_s10 = sshll.u32 %s1996_s9, 4  ;;  %p1925_p0 = scmp.ne.s32.totalorder %s2239_s0, %s1924_s13  ;;  %s16_s10 = int_to_ptr.vmem [resolvable:$true] %s15_s10 }
   0x4   :  { %p1928_p1 = scmp.lt.u32.totalorder %s1924_s13, %s2239_s0 }
   0x6   :  { %p1930_p2 = pnand %p1928_p1, %p1925_p0 }
   0x8   :  { %1933 = shalt.err (!%p1930_p2)
}
   0x9   :  { %s1934_s18 = scalar_lea.vmem %s16_s10, 65536  ;;  %p1939_p4 = scmp.lt.s32.totalorder %s16_s10, %s16_s10 }
   0xa   :  { %p1935_p3 = scmp.ne.s32.totalorder %s16_s10, %s1934_s18  ;;  %p1940_p5 = scmp.lt.s32.totalorder %s1934_s18, %s1934_s18 }
   0xc   :  { %p1941_p6 = por %p1940_p5, %p1939_p4 }
   0xe   :  { %p1942_p7 = pnand %p1941_p6, %p1935_p3 }
  0x10   :  { %1945 = shalt.err (!%p1942_p7)
}
  0x11   :  { %s1997_s19 = smov 1024   ;;  %s1998_s20 = smov 64  }
  0x12   :  { %21 = dma.hbm_to_vmem [thread:$0]  %s2239_s0, 65536, %s16_s10, [#allocation3], %s1997_s19, %s1997_s19, %s1998_s20  }
  0x13   :  { %s1999_s23 = smov [#allocation5]   ;;  %s1946_s27 = scalar_lea.hbm %s2240_s1, 15360 }
  0x14   :  { %s27_s24 = sshll.u32 %s1999_s23, 4  ;;  %p1947_p8 = scmp.ne.s32.totalorder %s2240_s1, %s1946_s27  ;;  %s28_s24 = int_to_ptr.vmem [resolvable:$true] %s27_s24 }
  0x15   :  { %p1950_p9 = scmp.lt.u32.totalorder %s1946_s27, %s2240_s1 }
  0x17   :  { %p1952_p10 = pnand %p1950_p9, %p1947_p8 }
  0x19   :  { %1955 = shalt.err (!%p1952_p10)
}
  0x1a   :  { %s1956_s4 = scalar_lea.vmem %s28_s24, 15360  ;;  %p1961_p12 = scmp.lt.s32.totalorder %s28_s24, %s28_s24 }
  0x1b   :  { %p1957_p11 = scmp.ne.s32.totalorder %s28_s24, %s1956_s4  ;;  %p1962_p13 = scmp.lt.s32.totalorder %s1956_s4, %s1956_s4 }
  0x1d   :  { %p1963_p0 = por %p1962_p13, %p1961_p12 }
  0x1f   :  { %p1964_p1 = pnand %p1963_p0, %p1957_p11 }
  0x21   :  { %1967 = shalt.err (!%p1964_p1)
}
  0x22   :  { %s2000_s0 = smov 128   ;;  %s2001_s5 = smov 8  }
  0x23   :  { %33 = dma.hbm_to_vmem [thread:$0]  %s2240_s1, 15360, %s28_s24, [#allocation6], %s2000_s0, %s2000_s0, %s2001_s5  }
  0x24   :  { %1990 = dma.done.wait [#allocation3], 65536  }
  0x25   :  { %1991 = vsyncadd [#allocation3], 4294901760 }
  0x26   :  { %1992 = dma.done.wait [#allocation6], 15360  }
  0x27   :  { %1993 = vsyncadd [#allocation6], 4294951936  ;;  %v1242_v0 = vld [vmem:[#allocation5 + $0x80] sm:$0xff]  ;;  %v1243_v1 = vld [vmem:[#allocation5 + $0x88] sm:$0xff]  ;;  %vm1362_vm0 = vcmask 1041409   ;;  %vm811_vm1 = vcmask 523264  }
  0x28   :  { %v1274_v2 = vld [vmem:[#allocation5 + $0x180] sm:$0xff]  ;;  %v1784_v3 = vpack.c.bf16 %v1243_v1, %v1242_v0  ;;  %v1275_v4 = vld [vmem:[#allocation5 + $0x188] sm:$0xff]  ;;  %v1244_v11 = vld [vmem:[#allocation5 + $0x90] sm:$0xff]  ;;  %s2003_s1 = smov [#allocation7]   ;;  %vm1660_vm2 = vcmask 25600  }
  0x29   :  { %v1226_v5 = vld [vmem:[#allocation5] sm:$0xff]  ;;  %v1227_v6 = vld [vmem:[#allocation5 + $0x8] sm:$0xff]  ;;  %v1816_v7 = vpack.c.bf16 %v1275_v4, %v1274_v2  ;;  %v1245_v13 = vld [vmem:[#allocation5 + $0x98] sm:$0xff]  ;;  %s1668_s8 = sshll.u32 %s2003_s1, 4  ;;  %s1669_s8 = int_to_ptr.vmem [resolvable:$true] %s1668_s8 }
  0x2a   :  { %v1786_v8 = vpack.c.bf16 %v1227_v6, %v1226_v5  ;;  %v1258_v9 = vld [vmem:[#allocation5 + $0x100] sm:$0xff]  ;;  %v1259_v10 = vld [vmem:[#allocation5 + $0x108] sm:$0xff]  ;;  %1785 = vmatprep.subr.bf16.mxu0 %v1784_v3  ;;  %v1276_v14 = vld [vmem:[#allocation5 + $0x190] sm:$0xff]  ;;  %v1788_v16 = vpack.c.bf16 %v1245_v13, %v1244_v11  ;;  %s1968_s9 = scalar_lea.vmem %s1669_s8, 32  ;;  %p1973_p3 = scmp.lt.s32.totalorder %s1669_s8, %s1669_s8 }
  0x2b   :  { %v1818_v12 = vpack.c.bf16 %v1259_v10, %v1258_v9  ;;  %v1277_v15 = vld [vmem:[#allocation5 + $0x198] sm:$0xff]  ;;  %1817 = vmatprep.subr.bf16.mxu1 %v1816_v7  ;;  %v1228_v18 = vld [vmem:[#allocation5 + $0x10] sm:$0xff]  ;;  %v1246_v23 = vld [vmem:[#allocation5 + $0xa0] sm:$0xff]  ;;  %p1969_p2 = scmp.ne.s32.totalorder %s1669_s8, %s1968_s9  ;;  %p1974_p4 = scmp.lt.s32.totalorder %s1968_s9, %s1968_s9 }
  0x2c   :  { %1787 = vmatpush3.bf16.msra.mxu0 %v1786_v8  ;;  %v1820_v17 = vpack.c.bf16 %v1277_v15, %v1276_v14  ;;  %v1229_v19 = vld [vmem:[#allocation5 + $0x18] sm:$0xff]  ;;  %v1260_v20 = vld [vmem:[#allocation5 + $0x110] sm:$0xff]  ;;  %v1247_v24 = vld [vmem:[#allocation5 + $0xa8] sm:$0xff] }
  0x2d   :  { %1819 = vmatpush3.bf16.msra.mxu1 %v1818_v12  ;;  %v1790_v21 = vpack.c.bf16 %v1229_v19, %v1228_v18  ;;  %v1261_v22 = vld [vmem:[#allocation5 + $0x118] sm:$0xff]  ;;  %1789 = vmatprep.subr.bf16.mxu0 %v1788_v16  ;;  %v1792_v26 = vpack.c.bf16 %v1247_v24, %v1246_v23  ;;  %v1278_v27 = vld [vmem:[#allocation5 + $0x1a0] sm:$0xff]  ;;  %v1279_v28 = vld [vmem:[#allocation5 + $0x1a8] sm:$0xff]  ;;  %p1975_p5 = por %p1974_p4, %p1973_p3 }
  0x2e   :  { %1821 = vmatprep.subr.bf16.mxu1 %v1820_v17  ;;  %v1822_v25 = vpack.c.bf16 %v1261_v22, %v1260_v20  ;;  %v1230_v29 = vld [vmem:[#allocation5 + $0x20] sm:$0xff]  ;;  %v1824_v30 = vpack.c.bf16 %v1279_v28, %v1278_v27  ;;  %v1231_v31 = vld [vmem:[#allocation5 + $0x28] sm:$0xff]  ;;  %v1248_v35 = vld [vmem:[#allocation5 + $0xb0] sm:$0xff] }
  0x2f   :  { %v1262_v32 = vld [vmem:[#allocation5 + $0x120] sm:$0xff]  ;;  %v1263_v33 = vld [vmem:[#allocation5 + $0x128] sm:$0xff]  ;;  %v1794_v34 = vpack.c.bf16 %v1231_v31, %v1230_v29  ;;  %v1249_v36 = vld [vmem:[#allocation5 + $0xb8] sm:$0xff]  ;;  %p1976_p6 = pnand %p1975_p5, %p1969_p2 }
  0x30   :  { %1791 = vmatpush3.bf16.msra.mxu0 %v1790_v21  ;;  %v1280_v37 = vld [vmem:[#allocation5 + $0x1b0] sm:$0xff]  ;;  %v1826_v38 = vpack.c.bf16 %v1263_v33, %v1262_v32  ;;  %v1796_v39 = vpack.c.bf16 %v1249_v36, %v1248_v35  ;;  %v1281_v40 = vld [vmem:[#allocation5 + $0x1b8] sm:$0xff]  ;;  %v1250_v46 = vld [vmem:[#allocation5 + $0xc0] sm:$0xff] }
  0x31   :  { %1823 = vmatpush3.bf16.msra.mxu1 %v1822_v25  ;;  %1793 = vmatprep.subr.bf16.mxu0 %v1792_v26  ;;  %v1232_v41 = vld [vmem:[#allocation5 + $0x30] sm:$0xff]  ;;  %v1233_v42 = vld [vmem:[#allocation5 + $0x38] sm:$0xff]  ;;  %v1828_v43 = vpack.c.bf16 %v1281_v40, %v1280_v37  ;;  %v1251_v47 = vld [vmem:[#allocation5 + $0xc8] sm:$0xff] }
  0x32   :  { %1825 = vmatprep.subr.bf16.mxu1 %v1824_v30  ;;  %v1264_v44 = vld [vmem:[#allocation5 + $0x130] sm:$0xff]  ;;  %v1265_v45 = vld [vmem:[#allocation5 + $0x138] sm:$0xff]  ;;  %v1282_v48 = vld [vmem:[#allocation5 + $0x1c0] sm:$0xff]  ;;  %v1798_v50 = vpack.c.bf16 %v1233_v42, %v1232_v41  ;;  %v1800_v52 = vpack.c.bf16 %v1251_v47, %v1250_v46 }
  0x33   :  { %v1283_v49 = vld [vmem:[#allocation5 + $0x1c8] sm:$0xff]  ;;  %v1830_v51 = vpack.c.bf16 %v1265_v45, %v1264_v44  ;;  %v1234_v53 = vld [vmem:[#allocation5 + $0x40] sm:$0xff]  ;;  %v1252_v58 = vld [vmem:[#allocation5 + $0xd0] sm:$0xff] }
  0x34   :  { %1795 = vmatpush3.bf16.msra.mxu0 %v1794_v34  ;;  %v1235_v54 = vld [vmem:[#allocation5 + $0x48] sm:$0xff]  ;;  %v1266_v55 = vld [vmem:[#allocation5 + $0x140] sm:$0xff]  ;;  %v1832_v56 = vpack.c.bf16 %v1283_v49, %v1282_v48  ;;  %v1253_v59 = vld [vmem:[#allocation5 + $0xd8] sm:$0xff] }
  0x35   :  { %1827 = vmatpush3.bf16.msra.mxu1 %v1826_v38  ;;  %1797 = vmatprep.subr.bf16.mxu0 %v1796_v39  ;;  %v1267_v57 = vld [vmem:[#allocation5 + $0x148] sm:$0xff]  ;;  %v1284_v60 = vld [vmem:[#allocation5 + $0x1d0] sm:$0xff]  ;;  %v1285_v61 = vld [vmem:[#allocation5 + $0x1d8] sm:$0xff]  ;;  %v1802_v62 = vpack.c.bf16 %v1235_v54, %v1234_v53  ;;  %v1804_v0 = vpack.c.bf16 %v1253_v59, %v1252_v58  ;;  %v2002_v53 = vmov 0.0|0.0  }
  0x36   :  { %1829 = vmatprep.subr.bf16.mxu1 %v1828_v43  ;;  %v1834_v63 = vpack.c.bf16 %v1267_v57, %v1266_v55  ;;  %v1236_v1 = vld [vmem:[#allocation5 + $0x50] sm:$0xff]  ;;  %v1237_v2 = vld [vmem:[#allocation5 + $0x58] sm:$0xff]  ;;  %v1836_v4 = vpack.c.bf16 %v1285_v61, %v1284_v60  ;;  %v1254_v6 = vld [vmem:[#allocation5 + $0xe0] sm:$0xff] }
  0x37   :  { %v1268_v3 = vld [vmem:[#allocation5 + $0x150] sm:$0xff]  ;;  %v1269_v5 = vld [vmem:[#allocation5 + $0x158] sm:$0xff]  ;;  %v1255_v7 = vld [vmem:[#allocation5 + $0xe8] sm:$0xff]  ;;  %v1806_v10 = vpack.c.bf16 %v1237_v2, %v1236_v1 }
  0x38   :  { %1799 = vmatpush3.bf16.msra.mxu0 %v1798_v50  ;;  %v1286_v8 = vld [vmem:[#allocation5 + $0x1e0] sm:$0xff]  ;;  %v1287_v9 = vld [vmem:[#allocation5 + $0x1e8] sm:$0xff]  ;;  %v1838_v14 = vpack.c.bf16 %v1269_v5, %v1268_v3  ;;  %v1808_v15 = vpack.c.bf16 %v1255_v7, %v1254_v6  ;;  %v1256_v20 = vld [vmem:[#allocation5 + $0xf0] sm:$0xff] }
  0x39   :  { %1831 = vmatpush3.bf16.msra.mxu1 %v1830_v51  ;;  %1801 = vmatprep.subr.bf16.mxu0 %v1800_v52  ;;  %v1238_v11 = vld [vmem:[#allocation5 + $0x60] sm:$0xff]  ;;  %v1239_v12 = vld [vmem:[#allocation5 + $0x68] sm:$0xff]  ;;  %v1840_v19 = vpack.c.bf16 %v1287_v9, %v1286_v8  ;;  %v1257_v21 = vld [vmem:[#allocation5 + $0xf8] sm:$0xff] }
  0x3a   :  { %1833 = vmatprep.subr.bf16.mxu1 %v1832_v56  ;;  %v1270_v13 = vld [vmem:[#allocation5 + $0x160] sm:$0xff]  ;;  %v1271_v16 = vld [vmem:[#allocation5 + $0x168] sm:$0xff]  ;;  %v1288_v24 = vld [vmem:[#allocation5 + $0x1f0] sm:$0xff]  ;;  %v1810_v27 = vpack.c.bf16 %v1239_v12, %v1238_v11  ;;  %v1812_v30 = vpack.c.bf16 %v1257_v21, %v1256_v20 }
  0x3b   :  { %v41_v17 = vld [vmem:[#allocation2 + $0x8] sm:$0xff]  ;;  %v1289_v25 = vld [vmem:[#allocation5 + $0x1f8] sm:$0xff]  ;;  %v1842_v29 = vpack.c.bf16 %v1271_v16, %v1270_v13  ;;  %v1240_v31 = vld [vmem:[#allocation5 + $0x70] sm:$0xff] }
  0x3c   :  { %1803 = vmatpush3.bf16.msra.mxu0 %v1802_v62  ;;  %v49_v18 = vld [vmem:[#allocation2 + $0x48] sm:$0xff]  ;;  %v1241_v32 = vld [vmem:[#allocation5 + $0x78] sm:$0xff]  ;;  %v1844_v34 = vpack.c.bf16 %v1289_v25, %v1288_v24  ;;  %v1272_v35 = vld [vmem:[#allocation5 + $0x170] sm:$0xff] }
  0x3d   :  { %1835 = vmatpush3.bf16.msra.mxu1 %v1834_v63  ;;  %1805 = vmatprep.subr.bf16.mxu0 %v1804_v0  ;;  %v57_v22 = vld [vmem:[#allocation2 + $0x88] sm:$0xff]  ;;  %v589_v23 = vadd.f32 %v49_v18, %v41_v17  ;;  %v1273_v36 = vld [vmem:[#allocation5 + $0x178] sm:$0xff]  ;;  %v1814_v39 = vpack.c.bf16 %v1241_v32, %v1240_v31 }
  0x3e   :  { %1837 = vmatprep.subr.bf16.mxu1 %v1836_v4  ;;  %v65_v26 = vld [vmem:[#allocation2 + $0xc8] sm:$0xff]  ;;  %v1846_v41 = vpack.c.bf16 %v1273_v36, %v1272_v35  ;;  %v43_v6 = vld [vmem:[#allocation2 + $0x18] sm:$0xff] }
  0x3f   :  { %v590_v28 = vadd.f32 %v589_v23, %v57_v22  ;;  %v73_v33 = vld [vmem:[#allocation2 + $0x108] sm:$0xff]  ;;  %v51_v9 = vld [vmem:[#allocation2 + $0x58] sm:$0xff] }
  0x40   :  { %1807 = vmatpush3.bf16.msra.mxu0 %v1806_v10  ;;  %v81_v38 = vld [vmem:[#allocation2 + $0x148] sm:$0xff]  ;;  %v59_v10 = vld [vmem:[#allocation2 + $0x98] sm:$0xff]  ;;  %v663_v13 = vadd.f32 %v51_v9, %v43_v6 }
  0x41   :  { %1839 = vmatpush3.bf16.msra.mxu1 %v1838_v14  ;;  %1809 = vmatprep.subr.bf16.mxu0 %v1808_v15  ;;  %v591_v37 = vadd.f32 %v590_v28, %v65_v26  ;;  %v89_v42 = vld [vmem:[#allocation2 + $0x188] sm:$0xff]  ;;  %v67_v16 = vld [vmem:[#allocation2 + $0xd8] sm:$0xff] }
  0x42   :  { %1841 = vmatprep.subr.bf16.mxu1 %v1840_v19  ;;  %v97_v44 = vld [vmem:[#allocation2 + $0x1c8] sm:$0xff]  ;;  %v664_v19 = vadd.f32 %v663_v13, %v59_v10  ;;  %v75_v22 = vld [vmem:[#allocation2 + $0x118] sm:$0xff] }
  0x43   :  { %v592_v40 = vadd.f32 %v591_v37, %v73_v33  ;;  %v297_v45 = vld [vmem:[#allocation2 + $0x808] sm:$0xff]  ;;  %v83_v28 = vld [vmem:[#allocation2 + $0x158] sm:$0xff] }
  0x44   :  { %1811 = vmatpush3.bf16.msra.mxu0 %v1810_v27  ;;  %v305_v46 = vld [vmem:[#allocation2 + $0x848] sm:$0xff]  ;;  %v665_v25 = vadd.f32 %v664_v19, %v67_v16 }
  0x45   :  { %1843 = vmatpush3.bf16.msra.mxu1 %v1842_v29  ;;  %1813 = vmatprep.subr.bf16.mxu0 %v1812_v30  ;;  %v593_v43 = vadd.f32 %v592_v40, %v81_v38  ;;  %v313_v47 = vld [vmem:[#allocation2 + $0x888] sm:$0xff]  ;;  %v918_v50 = vadd.f32 %v305_v46, %v297_v45  ;;  %v99_v40 = vld [vmem:[#allocation2 + $0x1d8] sm:$0xff] }
  0x46   :  { %1845 = vmatprep.subr.bf16.mxu1 %v1844_v34  ;;  %v105_v49 = vld [vmem:[#allocation2 + $0x208] sm:$0xff]  ;;  %v666_v31 = vadd.f32 %v665_v25, %v75_v22  ;;  %v91_v34 = vld [vmem:[#allocation2 + $0x198] sm:$0xff] }
  0x47   :  { %v594_v48 = vadd.f32 %v593_v43, %v89_v42  ;;  %v321_v51 = vld [vmem:[#allocation2 + $0x8c8] sm:$0xff]  ;;  %v919_v55 = vadd.f32 %v918_v50, %v313_v47  ;;  %v307_v42 = vld [vmem:[#allocation2 + $0x858] sm:$0xff] }
  0x48   :  { %1815 = vmatpush3.bf16.msra.mxu0 %v1814_v39  ;;  %v113_v54 = vld [vmem:[#allocation2 + $0x248] sm:$0xff]  ;;  %v667_v38 = vadd.f32 %v666_v31, %v83_v28  ;;  %v315_v45 = vld [vmem:[#allocation2 + $0x898] sm:$0xff] }
  0x49   :  { %1847 = vmatpush3.bf16.msra.mxu1 %v1846_v41  ;;  %v595_v52 = vadd.f32 %v594_v48, %v97_v44  ;;  %v329_v56 = vld [vmem:[#allocation2 + $0x908] sm:$0xff]  ;;  %v920_v59 = vadd.f32 %v919_v55, %v321_v51  ;;  %v299_v41 = vld [vmem:[#allocation2 + $0x818] sm:$0xff] }
  0x4a   :  { %1880 = vmatprep.subr.bf16.mxu1 %v2002_v53  ;;  %v121_v58 = vld [vmem:[#allocation2 + $0x288] sm:$0xff]  ;;  %v668_v46 = vadd.f32 %v667_v38, %v91_v34  ;;  %v992_v47 = vadd.f32 %v307_v42, %v299_v41  ;;  %v107_v50 = vld [vmem:[#allocation2 + $0x218] sm:$0xff]  ;;  %v56_v34 = vld [vmem:[#allocation2 + $0x80] sm:$0xff] }
  0x4b   :  { %v596_v57 = vadd.f32 %v595_v52, %v105_v49  ;;  %v337_v60 = vld [vmem:[#allocation2 + $0x948] sm:$0xff]  ;;  %v921_v63 = vadd.f32 %v920_v59, %v329_v56  ;;  %v323_v51 = vld [vmem:[#allocation2 + $0x8d8] sm:$0xff] }
  0x4c   :  { %v129_v62 = vld [vmem:[#allocation2 + $0x2c8] sm:$0xff]  ;;  %v669_v55 = vadd.f32 %v668_v46, %v99_v40  ;;  %v993_v56 = vadd.f32 %v992_v47, %v315_v45  ;;  %v115_v59 = vld [vmem:[#allocation2 + $0x258] sm:$0xff] }
  0x4d   :  { %v597_v61 = vadd.f32 %v596_v57, %v113_v54  ;;  %v345_v0 = vld [vmem:[#allocation2 + $0x988] sm:$0xff]  ;;  %v922_v3 = vadd.f32 %v921_v63, %v337_v60  ;;  %v331_v60 = vld [vmem:[#allocation2 + $0x918] sm:$0xff] }
  0x4e   :  { %v137_v2 = vld [vmem:[#allocation2 + $0x308] sm:$0xff]  ;;  %v670_v63 = vadd.f32 %v669_v55, %v107_v50  ;;  %v147_v22 = vld [vmem:[#allocation2 + $0x358] sm:$0xff]  ;;  %v72_v55 = vld [vmem:[#allocation2 + $0x100] sm:$0xff] }
  0x4f   :  { %v598_v1 = vadd.f32 %v597_v61, %v121_v58  ;;  %v353_v4 = vld [vmem:[#allocation2 + $0x9c8] sm:$0xff]  ;;  %v923_v8 = vadd.f32 %v922_v3, %v345_v0  ;;  %v994_v0 = vadd.f32 %v993_v56, %v323_v51  ;;  %v123_v3 = vld [vmem:[#allocation2 + $0x298] sm:$0xff] }
  0x50   :  { %v145_v7 = vld [vmem:[#allocation2 + $0x348] sm:$0xff]  ;;  %v363_v31 = vld [vmem:[#allocation2 + $0xa18] sm:$0xff] }
  0x51   :  { %v599_v5 = vadd.f32 %v598_v1, %v129_v62  ;;  %v361_v11 = vld [vmem:[#allocation2 + $0xa08] sm:$0xff]  ;;  %v924_v15 = vadd.f32 %v923_v8, %v353_v4  ;;  %v339_v4 = vld [vmem:[#allocation2 + $0x958] sm:$0xff]  ;;  %v995_v8 = vadd.f32 %v994_v0, %v331_v60 }
  0x52   :  { %v153_v14 = vld [vmem:[#allocation2 + $0x388] sm:$0xff]  ;;  %v155_v42 = vld [vmem:[#allocation2 + $0x398] sm:$0xff] }
  0x53   :  { %v600_v12 = vadd.f32 %v599_v5, %v137_v2  ;;  %v369_v17 = vld [vmem:[#allocation2 + $0xa48] sm:$0xff]  ;;  %v925_v21 = vadd.f32 %v924_v15, %v361_v11  ;;  %v131_v11 = vld [vmem:[#allocation2 + $0x2d8] sm:$0xff] }
  0x54   :  { %v161_v20 = vld [vmem:[#allocation2 + $0x3c8] sm:$0xff]  ;;  %v387_v0 = vld [vmem:[#allocation2 + $0xad8] sm:$0xff] }
  0x55   :  { %v601_v18 = vadd.f32 %v600_v12, %v145_v7  ;;  %v377_v23 = vld [vmem:[#allocation2 + $0xa88] sm:$0xff]  ;;  %v926_v27 = vadd.f32 %v925_v21, %v369_v17  ;;  %v671_v7 = vadd.f32 %v670_v63, %v115_v59  ;;  %v347_v12 = vld [vmem:[#allocation2 + $0x998] sm:$0xff] }
  0x56   :  { %v169_v26 = vld [vmem:[#allocation2 + $0x408] sm:$0xff]  ;;  %v139_v21 = vld [vmem:[#allocation2 + $0x318] sm:$0xff] }
  0x57   :  { %v602_v24 = vadd.f32 %v601_v18, %v153_v14  ;;  %v385_v29 = vld [vmem:[#allocation2 + $0xac8] sm:$0xff]  ;;  %v927_v33 = vadd.f32 %v926_v27, %v377_v23  ;;  %v672_v17 = vadd.f32 %v671_v7, %v123_v3  ;;  %v996_v18 = vadd.f32 %v995_v8, %v339_v4  ;;  %v355_v23 = vld [vmem:[#allocation2 + $0x9d8] sm:$0xff]  ;;  %v1306_v27 = vld [vmem:[#allocation5 + $0x280] sm:$0xff] }
  0x58   :  { %v177_v32 = vld [vmem:[#allocation2 + $0x448] sm:$0xff]  ;;  %v171_v63 = vld [vmem:[#allocation2 + $0x418] sm:$0xff] }
  0x59   :  { %v603_v30 = vadd.f32 %v602_v24, %v161_v20  ;;  %v185_v35 = vld [vmem:[#allocation2 + $0x488] sm:$0xff]  ;;  %v928_v39 = vadd.f32 %v927_v33, %v385_v29  ;;  %v673_v25 = vadd.f32 %v672_v17, %v131_v11  ;;  %v40_v29 = vld [vmem:[#allocation2] sm:$0xff]  ;;  %v395_v11 = vld [vmem:[#allocation2 + $0xb18] sm:$0xff] }
  0x5a   :  { %v393_v36 = vld [vmem:[#allocation2 + $0xb08] sm:$0xff]  ;;  %v48_v33 = vld [vmem:[#allocation2 + $0x40] sm:$0xff] }
  0x5b   :  { %v604_v37 = vadd.f32 %v603_v30, %v169_v26  ;;  %v401_v43 = vld [vmem:[#allocation2 + $0xb48] sm:$0xff]  ;;  %v929_v49 = vadd.f32 %v928_v39, %v393_v36  ;;  %v997_v26 = vadd.f32 %v996_v18, %v347_v12  ;;  %v674_v38 = vadd.f32 %v673_v25, %v139_v21  ;;  %v88_v12 = vld [vmem:[#allocation2 + $0x180] sm:$0xff] }
  0x5c   :  { %v193_v48 = vld [vmem:[#allocation2 + $0x4c8] sm:$0xff]  ;;  %v552_v40 = vadd.f32 %v48_v33, %v40_v29  ;;  %v96_v21 = vld [vmem:[#allocation2 + $0x1c0] sm:$0xff]  ;;  %v411_v33 = vld [vmem:[#allocation2 + $0xb98] sm:$0xff] }
  0x5d   :  { %v605_v44 = vadd.f32 %v604_v37, %v177_v32  ;;  %v409_v52 = vld [vmem:[#allocation2 + $0xb88] sm:$0xff]  ;;  %v930_v58 = vadd.f32 %v929_v49, %v401_v43  ;;  %v998_v39 = vadd.f32 %v997_v26, %v355_v23  ;;  %v371_v43 = vld [vmem:[#allocation2 + $0xa58] sm:$0xff]  ;;  %v304_v23 = vld [vmem:[#allocation2 + $0x840] sm:$0xff] }
  0x5e   :  { %v201_v57 = vld [vmem:[#allocation2 + $0x508] sm:$0xff]  ;;  %v553_v50 = vadd.f32 %v552_v40, %v56_v34  ;;  %v312_v29 = vld [vmem:[#allocation2 + $0x880] sm:$0xff] }
  0x5f   :  { %v606_v54 = vadd.f32 %v605_v44, %v185_v35  ;;  %v417_v61 = vld [vmem:[#allocation2 + $0xbc8] sm:$0xff]  ;;  %v931_v2 = vadd.f32 %v930_v58, %v409_v52  ;;  %v64_v44 = vld [vmem:[#allocation2 + $0xc0] sm:$0xff]  ;;  %v999_v49 = vadd.f32 %v998_v39, %v363_v31  ;;  %v163_v52 = vld [vmem:[#allocation2 + $0x3d8] sm:$0xff] }
  0x60   :  { %v209_v1 = vld [vmem:[#allocation2 + $0x548] sm:$0xff]  ;;  %v104_v34 = vld [vmem:[#allocation2 + $0x200] sm:$0xff] }
  0x61   :  { %v607_v62 = vadd.f32 %v606_v54, %v193_v48  ;;  %v425_v5 = vld [vmem:[#allocation2 + $0xc08] sm:$0xff]  ;;  %v932_v10 = vadd.f32 %v931_v2, %v417_v61  ;;  %v675_v48 = vadd.f32 %v674_v38, %v147_v22  ;;  %v379_v54 = vld [vmem:[#allocation2 + $0xa98] sm:$0xff]  ;;  %v1000_v60 = vadd.f32 %v999_v49, %v371_v43  ;;  %v296_v22 = vld [vmem:[#allocation2 + $0x800] sm:$0xff] }
  0x62   :  { %v217_v9 = vld [vmem:[#allocation2 + $0x588] sm:$0xff]  ;;  %v554_v61 = vadd.f32 %v553_v50, %v64_v44  ;;  %v203_v44 = vld [vmem:[#allocation2 + $0x518] sm:$0xff] }
  0x63   :  { %v608_v6 = vadd.f32 %v607_v62, %v201_v57  ;;  %v225_v13 = vld [vmem:[#allocation2 + $0x5c8] sm:$0xff]  ;;  %v933_v20 = vadd.f32 %v932_v10, %v425_v5  ;;  %v676_v59 = vadd.f32 %v675_v48, %v155_v42  ;;  %v179_v10 = vld [vmem:[#allocation2 + $0x458] sm:$0xff] }
  0x64   :  { %v433_v14 = vld [vmem:[#allocation2 + $0xc48] sm:$0xff]  ;;  %v555_v7 = vadd.f32 %v554_v61, %v72_v55 }
  0x65   :  { %v441_v15 = vld [vmem:[#allocation2 + $0xc88] sm:$0xff]  ;;  %v609_v16 = vadd.f32 %v608_v6, %v209_v1  ;;  %v934_v30 = vadd.f32 %v933_v20, %v433_v14  ;;  %v80_v1 = vld [vmem:[#allocation2 + $0x140] sm:$0xff]  ;;  %v677_v5 = vadd.f32 %v676_v59, %v163_v52  ;;  %v1001_v6 = vadd.f32 %v1000_v60, %v379_v54 }
  0x66   :  { %v233_v19 = vld [vmem:[#allocation2 + $0x608] sm:$0xff]  ;;  %v328_v52 = vld [vmem:[#allocation2 + $0x900] sm:$0xff] }
  0x67   :  { %v610_v24 = vadd.f32 %v609_v16, %v217_v9  ;;  %v1307_v28 = vld [vmem:[#allocation5 + $0x288] sm:$0xff]  ;;  %v935_v41 = vadd.f32 %v934_v30, %v441_v15  ;;  %v187_v15 = vld [vmem:[#allocation2 + $0x498] sm:$0xff]  ;;  %v678_v17 = vadd.f32 %v677_v5, %v171_v63  ;;  %v1002_v18 = vadd.f32 %v1001_v6, %v387_v0  ;;  %v128_v6 = vld [vmem:[#allocation2 + $0x2c0] sm:$0xff] }
  0x68   :  { %v1848_v32 = vpack.c.bf16 %v1307_v28, %v1306_v27  ;;  %v241_v35 = vld [vmem:[#allocation2 + $0x648] sm:$0xff]  ;;  %v403_v16 = vld [vmem:[#allocation2 + $0xb58] sm:$0xff] }
  0x69   :  { %v449_v36 = vld [vmem:[#allocation2 + $0xcc8] sm:$0xff]  ;;  %v611_v37 = vadd.f32 %v610_v24, %v225_v13  ;;  %v679_v27 = vadd.f32 %v678_v17, %v179_v10  ;;  %v1003_v28 = vadd.f32 %v1002_v18, %v395_v11  ;;  %v435_v5 = vld [vmem:[#allocation2 + $0xc58] sm:$0xff]  ;;  %v136_v17 = vld [vmem:[#allocation2 + $0x300] sm:$0xff] }
  0x6a   :  { %1849 = vmatprep.subr.bf16.mxu0 %v1848_v32  ;;  %v249_v45 = vld [vmem:[#allocation2 + $0x688] sm:$0xff]  ;;  %v936_v51 = vadd.f32 %v935_v41, %v449_v36  ;;  %v195_v32 = vld [vmem:[#allocation2 + $0x4d8] sm:$0xff]  ;;  %v320_v41 = vld [vmem:[#allocation2 + $0x8c0] sm:$0xff] }
  0x6b   :  { %v457_v46 = vld [vmem:[#allocation2 + $0xd08] sm:$0xff]  ;;  %v612_v47 = vadd.f32 %v611_v37, %v233_v19  ;;  %v556_v19 = vadd.f32 %v555_v7, %v80_v1  ;;  %v680_v39 = vadd.f32 %v679_v27, %v187_v15  ;;  %v1004_v40 = vadd.f32 %v1003_v28, %v403_v16  ;;  %v336_v1 = vld [vmem:[#allocation2 + $0x940] sm:$0xff]  ;;  %v227_v10 = vld [vmem:[#allocation2 + $0x5d8] sm:$0xff] }
  0x6c   :  { %v257_v56 = vld [vmem:[#allocation2 + $0x6c8] sm:$0xff]  ;;  %v937_v62 = vadd.f32 %v936_v51, %v457_v46  ;;  %v112_v46 = vld [vmem:[#allocation2 + $0x240] sm:$0xff]  ;;  %v443_v16 = vld [vmem:[#allocation2 + $0xc98] sm:$0xff] }
  0x6d   :  { %v465_v57 = vld [vmem:[#allocation2 + $0xd48] sm:$0xff]  ;;  %v613_v58 = vadd.f32 %v612_v47, %v241_v35  ;;  %v557_v30 = vadd.f32 %v556_v19, %v88_v12  ;;  %v881_v35 = vadd.f32 %v304_v23, %v296_v22  ;;  %v681_v50 = vadd.f32 %v680_v39, %v195_v32  ;;  %v352_v18 = vld [vmem:[#allocation2 + $0x9c0] sm:$0xff]  ;;  %v235_v28 = vld [vmem:[#allocation2 + $0x618] sm:$0xff] }
  0x6e   :  { %v265_v2 = vld [vmem:[#allocation2 + $0x708] sm:$0xff]  ;;  %v938_v9 = vadd.f32 %v937_v62, %v465_v57  ;;  %v1005_v51 = vadd.f32 %v1004_v40, %v411_v33  ;;  %v427_v57 = vld [vmem:[#allocation2 + $0xc18] sm:$0xff] }
  0x6f   :  { %v473_v3 = vld [vmem:[#allocation2 + $0xd88] sm:$0xff]  ;;  %v614_v4 = vadd.f32 %v613_v58, %v249_v45  ;;  %v558_v42 = vadd.f32 %v557_v30, %v96_v21  ;;  %v419_v45 = vld [vmem:[#allocation2 + $0xbd8] sm:$0xff]  ;;  %v882_v47 = vadd.f32 %v881_v35, %v312_v29  ;;  %v120_v58 = vld [vmem:[#allocation2 + $0x280] sm:$0xff]  ;;  %v682_v63 = vadd.f32 %v681_v50, %v203_v44 }
  0x70   :  { %v273_v8 = vld [vmem:[#allocation2 + $0x748] sm:$0xff]  ;;  %v939_v20 = vadd.f32 %v938_v9, %v473_v3  ;;  %v1006_v0 = vadd.f32 %v1005_v51, %v419_v45  ;;  %v451_v29 = vld [vmem:[#allocation2 + $0xcd8] sm:$0xff]  ;;  %v144_v30 = vld [vmem:[#allocation2 + $0x340] sm:$0xff] }
  0x71   :  { %v481_v13 = vld [vmem:[#allocation2 + $0xdc8] sm:$0xff]  ;;  %v615_v14 = vadd.f32 %v614_v4, %v257_v56  ;;  %v559_v54 = vadd.f32 %v558_v42, %v104_v34  ;;  %v211_v56 = vld [vmem:[#allocation2 + $0x558] sm:$0xff]  ;;  %v883_v59 = vadd.f32 %v882_v47, %v320_v41  ;;  %v74_v51 = vld [vmem:[#allocation2 + $0x110] sm:$0xff] }
  0x72   :  { %v281_v24 = vld [vmem:[#allocation2 + $0x788] sm:$0xff]  ;;  %v940_v31 = vadd.f32 %v939_v20, %v481_v13  ;;  %v219_v4 = vld [vmem:[#allocation2 + $0x598] sm:$0xff]  ;;  %v683_v11 = vadd.f32 %v682_v63, %v211_v56  ;;  %v1007_v12 = vadd.f32 %v1006_v0, %v427_v57  ;;  %v344_v13 = vld [vmem:[#allocation2 + $0x980] sm:$0xff] }
  0x73   :  { %v489_v25 = vld [vmem:[#allocation2 + $0xe08] sm:$0xff]  ;;  %v616_v26 = vadd.f32 %v615_v14, %v265_v2  ;;  %v560_v2 = vadd.f32 %v559_v54, %v112_v46  ;;  %v884_v7 = vadd.f32 %v883_v59, %v328_v52  ;;  %v243_v41 = vld [vmem:[#allocation2 + $0x658] sm:$0xff]  ;;  %v160_v56 = vld [vmem:[#allocation2 + $0x3c0] sm:$0xff] }
  0x74   :  { %v289_v36 = vld [vmem:[#allocation2 + $0x7c8] sm:$0xff]  ;;  %v941_v43 = vadd.f32 %v940_v31, %v489_v25  ;;  %v684_v21 = vadd.f32 %v683_v11, %v219_v4  ;;  %v1008_v22 = vadd.f32 %v1007_v12, %v435_v5  ;;  %v50_v25 = vld [vmem:[#allocation2 + $0x50] sm:$0xff]  ;;  %v459_v42 = vld [vmem:[#allocation2 + $0xd18] sm:$0xff] }
  0x75   :  { %v497_v37 = vld [vmem:[#allocation2 + $0xe48] sm:$0xff]  ;;  %v617_v38 = vadd.f32 %v616_v26, %v273_v8  ;;  %v561_v14 = vadd.f32 %v560_v2, %v120_v58  ;;  %v885_v19 = vadd.f32 %v884_v7, %v336_v1  ;;  %v58_v26 = vld [vmem:[#allocation2 + $0x90] sm:$0xff]  ;;  %v251_v54 = vld [vmem:[#allocation2 + $0x698] sm:$0xff] }
  0x76   :  { %v505_v48 = vld [vmem:[#allocation2 + $0xe88] sm:$0xff]  ;;  %v942_v55 = vadd.f32 %v941_v43, %v497_v37  ;;  %v685_v34 = vadd.f32 %v684_v21, %v227_v10  ;;  %v1009_v35 = vadd.f32 %v1008_v22, %v443_v16  ;;  %v152_v43 = vld [vmem:[#allocation2 + $0x380] sm:$0xff]  ;;  %v82_v63 = vld [vmem:[#allocation2 + $0x150] sm:$0xff] }
  0x77   :  { %v618_v49 = vadd.f32 %v617_v38, %v281_v24  ;;  %v513_v60 = vld [vmem:[#allocation2 + $0xec8] sm:$0xff]  ;;  %v562_v23 = vadd.f32 %v561_v14, %v128_v6  ;;  %v42_v24 = vld [vmem:[#allocation2 + $0x10] sm:$0xff]  ;;  %v886_v31 = vadd.f32 %v885_v19, %v344_v13  ;;  %v259_v2 = vld [vmem:[#allocation2 + $0x6d8] sm:$0xff] }
  0x78   :  { %v521_v61 = vld [vmem:[#allocation2 + $0xf08] sm:$0xff]  ;;  %v943_v3 = vadd.f32 %v942_v55, %v505_v48  ;;  %v626_v32 = vadd.f32 %v50_v25, %v42_v24  ;;  %v66_v38 = vld [vmem:[#allocation2 + $0xd0] sm:$0xff]  ;;  %v686_v47 = vadd.f32 %v685_v34, %v235_v28  ;;  %v1010_v48 = vadd.f32 %v1009_v35, %v451_v29  ;;  %v467_v55 = vld [vmem:[#allocation2 + $0xd58] sm:$0xff] }
  0x79   :  { %v619_v62 = vadd.f32 %v618_v49, %v289_v36  ;;  %v529_v8 = vld [vmem:[#allocation2 + $0xf48] sm:$0xff]  ;;  %v360_v36 = vld [vmem:[#allocation2 + $0xa00] sm:$0xff]  ;;  %v563_v37 = vadd.f32 %v562_v23, %v136_v17  ;;  %v887_v44 = vadd.f32 %v886_v31, %v352_v18  ;;  %v267_v7 = vld [vmem:[#allocation2 + $0x718] sm:$0xff] }
  0x7a   :  { %v944_v15 = vadd.f32 %v943_v3, %v513_v60  ;;  %v537_v33 = vld [vmem:[#allocation2 + $0xf88] sm:$0xff]  ;;  %v627_v45 = vadd.f32 %v626_v32, %v58_v26  ;;  %v368_v49 = vld [vmem:[#allocation2 + $0xa40] sm:$0xff]  ;;  %v687_v59 = vadd.f32 %v686_v47, %v243_v41  ;;  %v1011_v60 = vadd.f32 %v1010_v48, %v459_v42  ;;  %v475_v3 = vld [vmem:[#allocation2 + $0xd98] sm:$0xff] }
  0x7b   :  { %v620_v9 = vrot.slane %v619_v62, 4  ;;  %v545_v46 = vld [vmem:[#allocation2 + $0xfc8] sm:$0xff]  ;;  %v564_v50 = vadd.f32 %v563_v37, %v144_v30  ;;  %v888_v57 = vadd.f32 %v887_v44, %v360_v36  ;;  %v168_v4 = vld [vmem:[#allocation2 + $0x400] sm:$0xff]  ;;  %v90_v12 = vld [vmem:[#allocation2 + $0x190] sm:$0xff] }
  0x7c   :  { %v945_v27 = vadd.f32 %v944_v15, %v521_v61  ;;  %v628_v58 = vadd.f32 %v627_v45, %v66_v38  ;;  %v376_v61 = vld [vmem:[#allocation2 + $0xa80] sm:$0xff]  ;;  %v275_v14 = vld [vmem:[#allocation2 + $0x758] sm:$0xff]  ;;  %v98_v24 = vld [vmem:[#allocation2 + $0x1d0] sm:$0xff] }
  0x7d   :  { %v621_v20 = vadd.f32 %v620_v9, %v619_v62  ;;  %v565_v62 = vadd.f32 %v564_v50, %v152_v43  ;;  %v889_v5 = vadd.f32 %v888_v57, %v368_v49  ;;  %v1012_v9 = vadd.f32 %v1011_v60, %v467_v55  ;;  %v384_v10 = vld [vmem:[#allocation2 + $0xac0] sm:$0xff]  ;;  %v483_v15 = vld [vmem:[#allocation2 + $0xdd8] sm:$0xff]  ;;  %v298_v25 = vld [vmem:[#allocation2 + $0x810] sm:$0xff] }
  0x7e   :  { %v946_v40 = vadd.f32 %v945_v27, %v529_v8  ;;  %v629_v6 = vadd.f32 %v628_v58, %v74_v51  ;;  %v688_v8 = vadd.f32 %v687_v59, %v251_v54  ;;  %v491_v16 = vld [vmem:[#allocation2 + $0xe18] sm:$0xff]  ;;  %v176_v17 = vld [vmem:[#allocation2 + $0x440] sm:$0xff]  ;;  %v306_v30 = vld [vmem:[#allocation2 + $0x850] sm:$0xff] }
  0x7f   :  { %v622_v39 = vrot.slane %v621_v20, 2  ;;  %v566_v11 = vadd.f32 %v565_v62, %v160_v56  ;;  %v890_v18 = vadd.f32 %v889_v5, %v376_v61  ;;  %v1013_v21 = vadd.f32 %v1012_v9, %v475_v3  ;;  %v392_v22 = vld [vmem:[#allocation2 + $0xb00] sm:$0xff]  ;;  %v314_v31 = vld [vmem:[#allocation2 + $0x890] sm:$0xff]  ;;  %v499_v41 = vld [vmem:[#allocation2 + $0xe58] sm:$0xff] }
  0x80   :  { %v947_v52 = vadd.f32 %v946_v40, %v537_v33  ;;  %v630_v19 = vadd.f32 %v629_v6, %v82_v63  ;;  %v184_v28 = vld [vmem:[#allocation2 + $0x480] sm:$0xff]  ;;  %v283_v33 = vld [vmem:[#allocation2 + $0x798] sm:$0xff]  ;;  %v106_v38 = vld [vmem:[#allocation2 + $0x210] sm:$0xff] }
  0x81   :  { %v623_v0 = vadd.f32 %v622_v39, %v621_v20  ;;  %v689_v20 = vadd.f32 %v688_v8, %v259_v2  ;;  %v567_v23 = vadd.f32 %v566_v11, %v168_v4  ;;  %v891_v29 = vadd.f32 %v890_v18, %v384_v10  ;;  %v400_v36 = vld [vmem:[#allocation2 + $0xb40] sm:$0xff]  ;;  %v322_v44 = vld [vmem:[#allocation2 + $0x8d0] sm:$0xff]  ;;  %v507_v56 = vld [vmem:[#allocation2 + $0xe98] sm:$0xff] }
  0x82   :  { %v948_v1 = vadd.f32 %v947_v52, %v545_v46  ;;  %v631_v32 = vadd.f32 %v630_v19, %v90_v12  ;;  %v1014_v35 = vadd.f32 %v1013_v21, %v483_v15  ;;  %v955_v39 = vadd.f32 %v306_v30, %v298_v25  ;;  %v192_v42 = vld [vmem:[#allocation2 + $0x4c0] sm:$0xff]  ;;  %v291_v46 = vld [vmem:[#allocation2 + $0x7d8] sm:$0xff]  ;;  %v114_v51 = vld [vmem:[#allocation2 + $0x250] sm:$0xff] }
  0x83   :  { %v624_v26 = vrot.slane %v623_v0, 1  ;;  %v690_v34 = vadd.f32 %v689_v20, %v267_v7  ;;  %v568_v37 = vadd.f32 %v567_v23, %v176_v17  ;;  %v892_v43 = vadd.f32 %v891_v29, %v392_v22  ;;  %v408_v49 = vld [vmem:[#allocation2 + $0xb80] sm:$0xff]  ;;  %v330_v59 = vld [vmem:[#allocation2 + $0x910] sm:$0xff]  ;;  %v515_v5 = vld [vmem:[#allocation2 + $0xed8] sm:$0xff] }
  0x84   :  { %v949_v13 = vrot.slane %v948_v1, 4  ;;  %v632_v45 = vadd.f32 %v631_v32, %v98_v24  ;;  %v1015_v48 = vadd.f32 %v1014_v35, %v491_v16  ;;  %v956_v52 = vadd.f32 %v955_v39, %v314_v31  ;;  %v200_v57 = vld [vmem:[#allocation2 + $0x500] sm:$0xff]  ;;  %v122_v2 = vld [vmem:[#allocation2 + $0x290] sm:$0xff]  ;;  %v523_v17 = vld [vmem:[#allocation2 + $0xf18] sm:$0xff] }
  0x85   :  { %v691_v47 = vadd.f32 %v690_v34, %v275_v14  ;;  %v569_v50 = vadd.f32 %v568_v37, %v184_v28  ;;  %v625_v54 = vadd.f32 %v624_v26, %v623_v0  ;;  %v893_v58 = vadd.f32 %v892_v43, %v400_v36  ;;  %v416_v63 = vld [vmem:[#allocation2 + $0xbc0] sm:$0xff]  ;;  %v338_v8 = vld [vmem:[#allocation2 + $0x950] sm:$0xff]  ;;  %v531_v29 = vld [vmem:[#allocation2 + $0xf58] sm:$0xff] }
  0x86   :  { %v950_v27 = vadd.f32 %v949_v13, %v948_v1  ;;  %v633_v60 = vadd.f32 %v632_v45, %v106_v38  ;;  %v1016_v62 = vadd.f32 %v1015_v48, %v499_v41  ;;  %v957_v3 = vadd.f32 %v956_v52, %v322_v44  ;;  %v208_v6 = vld [vmem:[#allocation2 + $0x540] sm:$0xff]  ;;  %v130_v13 = vld [vmem:[#allocation2 + $0x2d0] sm:$0xff]  ;;  %v539_v41 = vld [vmem:[#allocation2 + $0xf98] sm:$0xff] }
  0x87   :  { %v692_v61 = vadd.f32 %v691_v47, %v283_v33  ;;  %v570_v1 = vadd.f32 %v569_v50, %v192_v42  ;;  %v894_v7 = vadd.f32 %v893_v58, %v408_v49  ;;  %v424_v11 = vld [vmem:[#allocation2 + $0xc00] sm:$0xff]  ;;  %v1211_v16 = vmul.f32 0.00390625, %v625_v54  ;;  %v346_v20 = vld [vmem:[#allocation2 + $0x990] sm:$0xff]  ;;  %v547_v52 = vld [vmem:[#allocation2 + $0xfd8] sm:$0xff] }
  0x88   :  { %v951_v40 = vrot.slane %v950_v27, 2  ;;  %v634_v9 = vadd.f32 %v633_v60, %v114_v51  ;;  %v1017_v10 = vadd.f32 %v1016_v62, %v507_v56  ;;  %v958_v14 = vadd.f32 %v957_v3, %v330_v59  ;;  %v216_v18 = vld [vmem:[#allocation2 + $0x580] sm:$0xff]  ;;  %v138_v26 = vld [vmem:[#allocation2 + $0x310] sm:$0xff] }
  0x89   :  { %v693_v0 = vadd.f32 %v692_v61, %v291_v46  ;;  %v571_v12 = vadd.f32 %v570_v1, %v200_v57  ;;  %v895_v19 = vadd.f32 %v894_v7, %v416_v63  ;;  %v432_v24 = vld [vmem:[#allocation2 + $0xc40] sm:$0xff]  ;;  %v354_v32 = vld [vmem:[#allocation2 + $0x9d0] sm:$0xff] }
  0x8a   :  { %v952_v55 = vadd.f32 %v951_v40, %v950_v27  ;;  %v635_v21 = vadd.f32 %v634_v9, %v122_v2  ;;  %v1018_v23 = vadd.f32 %v1017_v10, %v515_v5  ;;  %v959_v27 = vadd.f32 %v958_v14, %v338_v8  ;;  %v224_v30 = vld [vmem:[#allocation2 + $0x5c0] sm:$0xff]  ;;  %v146_v38 = vld [vmem:[#allocation2 + $0x350] sm:$0xff] }
  0x8b   :  { %v694_v22 = vrot.slane %v693_v0, 4  ;;  %v572_v25 = vadd.f32 %v571_v12, %v208_v6  ;;  %v896_v31 = vadd.f32 %v895_v19, %v424_v11  ;;  %v440_v36 = vld [vmem:[#allocation2 + $0xc80] sm:$0xff]  ;;  %v362_v44 = vld [vmem:[#allocation2 + $0xa10] sm:$0xff] }
  0x8c   :  { %v953_v4 = vrot.slane %v952_v55, 1  ;;  %v636_v33 = vadd.f32 %v635_v21, %v130_v13  ;;  %v1019_v35 = vadd.f32 %v1018_v23, %v523_v17  ;;  %v960_v39 = vadd.f32 %v959_v27, %v346_v20  ;;  %v232_v42 = vld [vmem:[#allocation2 + $0x600] sm:$0xff]  ;;  %v154_v50 = vld [vmem:[#allocation2 + $0x390] sm:$0xff] }
  0x8d   :  { %v695_v34 = vadd.f32 %v694_v22, %v693_v0  ;;  %v573_v37 = vadd.f32 %v572_v25, %v216_v18  ;;  %v897_v43 = vadd.f32 %v896_v31, %v432_v24  ;;  %v448_v48 = vld [vmem:[#allocation2 + $0xcc0] sm:$0xff]  ;;  %v370_v56 = vld [vmem:[#allocation2 + $0xa50] sm:$0xff] }
  0x8e   :  { %v954_v15 = vadd.f32 %v953_v4, %v952_v55  ;;  %v637_v45 = vadd.f32 %v636_v33, %v138_v26  ;;  %v1020_v47 = vadd.f32 %v1019_v35, %v531_v29  ;;  %v961_v51 = vadd.f32 %v960_v39, %v354_v32  ;;  %v240_v54 = vld [vmem:[#allocation2 + $0x640] sm:$0xff]  ;;  %v162_v61 = vld [vmem:[#allocation2 + $0x3d0] sm:$0xff] }
  0x8f   :  { %v696_v46 = vrot.slane %v695_v34, 2  ;;  %v574_v49 = vadd.f32 %v573_v37, %v224_v30  ;;  %v898_v55 = vadd.f32 %v897_v43, %v440_v36  ;;  %v456_v59 = vld [vmem:[#allocation2 + $0xd00] sm:$0xff]  ;;  %v378_v2 = vld [vmem:[#allocation2 + $0xa90] sm:$0xff] }
  0x90   :  { %v1219_v28 = vmul.f32 0.00390625, %v954_v15  ;;  %v638_v57 = vadd.f32 %v637_v45, %v146_v38  ;;  %v1021_v58 = vadd.f32 %v1020_v47, %v539_v41  ;;  %v962_v62 = vadd.f32 %v961_v51, %v362_v44  ;;  %v248_v63 = vld [vmem:[#allocation2 + $0x680] sm:$0xff]  ;;  %v170_v8 = vld [vmem:[#allocation2 + $0x410] sm:$0xff] }
  0x91   :  { %v575_v60 = vadd.f32 %v574_v49, %v232_v42  ;;  %v899_v1 = vadd.f32 %v898_v55, %v448_v48  ;;  %v697_v4 = vadd.f32 %v696_v46, %v695_v34  ;;  %v464_v6 = vld [vmem:[#allocation2 + $0xd40] sm:$0xff]  ;;  %v386_v11 = vld [vmem:[#allocation2 + $0xad0] sm:$0xff] }
  0x92   :  { %v1364_v40 = vsel %vm1362_vm0, %v1219_v28, %v1211_v16  ;;  %v639_v3 = vadd.f32 %v638_v57, %v154_v50  ;;  %v1022_v5 = vadd.f32 %v1021_v58, %v547_v52  ;;  %v963_v9 = vadd.f32 %v962_v62, %v370_v56  ;;  %v256_v0 = vld [vmem:[#allocation2 + $0x6c0] sm:$0xff]  ;;  %v178_v16 = vld [vmem:[#allocation2 + $0x450] sm:$0xff] }
  0x93   :  { %1444 = vmatprep.mubr.f32.mxu0 %v1364_v40  ;;  %v576_v7 = vadd.f32 %v575_v60, %v240_v54  ;;  %v900_v10 = vadd.f32 %v899_v1, %v456_v59  ;;  %v472_v14 = vld [vmem:[#allocation2 + $0xd80] sm:$0xff]  ;;  %v394_v20 = vld [vmem:[#allocation2 + $0xb10] sm:$0xff]  ;;  %v698_v22 = vrot.slane %v697_v4, 1  ;;  %v45_v60 = vld [vmem:[#allocation2 + $0x28] sm:$0xff] }
  0x94   :  { %v640_v12 = vadd.f32 %v639_v3, %v162_v61  ;;  %v1023_v13 = vrot.slane %v1022_v5, 4  ;;  %v964_v17 = vadd.f32 %v963_v9, %v378_v2  ;;  %v264_v18 = vld [vmem:[#allocation2 + $0x700] sm:$0xff]  ;;  %v186_v26 = vld [vmem:[#allocation2 + $0x490] sm:$0xff]  ;;  %v53_v61 = vld [vmem:[#allocation2 + $0x68] sm:$0xff] }
  0x95   :  { %v577_v15 = vadd.f32 %v576_v7, %v248_v63  ;;  %v901_v19 = vadd.f32 %v900_v10, %v464_v6  ;;  %v480_v24 = vld [vmem:[#allocation2 + $0xdc0] sm:$0xff]  ;;  %v402_v30 = vld [vmem:[#allocation2 + $0xb50] sm:$0xff]  ;;  %v699_v41 = vadd.f32 %v698_v22, %v697_v4 }
  0x96   :  { %v641_v21 = vadd.f32 %v640_v12, %v170_v8  ;;  %v1024_v23 = vadd.f32 %v1023_v13, %v1022_v5  ;;  %v965_v27 = vadd.f32 %v964_v17, %v386_v11  ;;  %v272_v28 = vld [vmem:[#allocation2 + $0x740] sm:$0xff]  ;;  %v194_v35 = vld [vmem:[#allocation2 + $0x4d0] sm:$0xff]  ;;  %v61_v8 = vld [vmem:[#allocation2 + $0xa8] sm:$0xff]  ;;  %v737_v13 = vadd.f32 %v53_v61, %v45_v60 }
  0x97   :  { %v578_v25 = vadd.f32 %v577_v15, %v256_v0  ;;  %v902_v29 = vadd.f32 %v901_v19, %v472_v14  ;;  %v488_v33 = vld [vmem:[#allocation2 + $0xe00] sm:$0xff]  ;;  %v410_v39 = vld [vmem:[#allocation2 + $0xb90] sm:$0xff]  ;;  %v1213_v63 = vmul.f32 0.00390625, %v699_v41  ;;  %v69_v17 = vld [vmem:[#allocation2 + $0xe8] sm:$0xff] }
  0x98   :  { %v642_v31 = vadd.f32 %v641_v21, %v178_v16  ;;  %v1025_v32 = vrot.slane %v1024_v23, 2  ;;  %v966_v36 = vadd.f32 %v965_v27, %v394_v20  ;;  %v280_v37 = vld [vmem:[#allocation2 + $0x780] sm:$0xff]  ;;  %v202_v45 = vld [vmem:[#allocation2 + $0x510] sm:$0xff]  ;;  %v77_v27 = vld [vmem:[#allocation2 + $0x128] sm:$0xff] }
  0x99   :  { %v579_v34 = vadd.f32 %v578_v25, %v264_v18  ;;  %v903_v38 = vadd.f32 %v902_v29, %v480_v24  ;;  %v496_v43 = vld [vmem:[#allocation2 + $0xe40] sm:$0xff]  ;;  %v418_v49 = vld [vmem:[#allocation2 + $0xbd0] sm:$0xff]  ;;  %v333_v60 = vld [vmem:[#allocation2 + $0x928] sm:$0xff] }
  0x9a   :  { %v643_v40 = vadd.f32 %v642_v31, %v186_v26  ;;  %v1026_v42 = vadd.f32 %v1025_v32, %v1024_v23  ;;  %v967_v46 = vadd.f32 %v966_v36, %v402_v30  ;;  %v288_v47 = vld [vmem:[#allocation2 + $0x7c0] sm:$0xff]  ;;  %v210_v55 = vld [vmem:[#allocation2 + $0x550] sm:$0xff]  ;;  %v738_v23 = vadd.f32 %v737_v13, %v61_v8  ;;  %v85_v36 = vld [vmem:[#allocation2 + $0x168] sm:$0xff] }
  0x9b   :  { %v580_v44 = vadd.f32 %v579_v34, %v272_v28  ;;  %v904_v48 = vadd.f32 %v903_v38, %v488_v33  ;;  %v504_v52 = vld [vmem:[#allocation2 + $0xe80] sm:$0xff]  ;;  %v426_v58 = vld [vmem:[#allocation2 + $0xc10] sm:$0xff]  ;;  %v309_v38 = vld [vmem:[#allocation2 + $0x868] sm:$0xff] }
  0x9c   :  { %v644_v50 = vadd.f32 %v643_v40, %v194_v35  ;;  %v1027_v51 = vrot.slane %v1026_v42, 1  ;;  %v968_v56 = vadd.f32 %v967_v46, %v410_v39  ;;  %v512_v1 = vld [vmem:[#allocation2 + $0xec0] sm:$0xff]  ;;  %v218_v3 = vld [vmem:[#allocation2 + $0x590] sm:$0xff]  ;;  %v739_v32 = vadd.f32 %v738_v23, %v69_v17 }
  0x9d   :  { %v581_v54 = vadd.f32 %v580_v44, %v280_v37  ;;  %v905_v57 = vadd.f32 %v904_v48, %v496_v43  ;;  %v434_v6 = vld [vmem:[#allocation2 + $0xc50] sm:$0xff]  ;;  %v520_v0 = vld [vmem:[#allocation2 + $0xf00] sm:$0xff]  ;;  %v301_v37 = vld [vmem:[#allocation2 + $0x828] sm:$0xff] }
  0x9e   :  { %v645_v59 = vadd.f32 %v644_v50, %v202_v45  ;;  %v1028_v62 = vadd.f32 %v1027_v51, %v1026_v42  ;;  %v969_v4 = vadd.f32 %v968_v56, %v418_v49  ;;  %v226_v11 = vld [vmem:[#allocation2 + $0x5d0] sm:$0xff]  ;;  %v528_v19 = vld [vmem:[#allocation2 + $0xf40] sm:$0xff]  ;;  %v317_v42 = vld [vmem:[#allocation2 + $0x8a8] sm:$0xff]  ;;  %v740_v43 = vadd.f32 %v739_v32, %v77_v27 }
  0x9f   :  { %v582_v2 = vadd.f32 %v581_v54, %v288_v47  ;;  %v906_v5 = vadd.f32 %v905_v57, %v504_v52  ;;  %v442_v15 = vld [vmem:[#allocation2 + $0xc90] sm:$0xff]  ;;  %v536_v28 = vld [vmem:[#allocation2 + $0xf80] sm:$0xff]  ;;  %v1066_v44 = vadd.f32 %v309_v38, %v301_v37  ;;  %v93_v48 = vld [vmem:[#allocation2 + $0x1a8] sm:$0xff] }
  0xa0   :  { %v646_v7 = vadd.f32 %v645_v59, %v210_v55  ;;  %v1221_v9 = vmul.f32 0.00390625, %v1028_v62  ;;  %v970_v12 = vadd.f32 %v969_v4, %v426_v58  ;;  %v234_v21 = vld [vmem:[#allocation2 + $0x610] sm:$0xff]  ;;  %v544_v39 = vld [vmem:[#allocation2 + $0xfc0] sm:$0xff]  ;;  %v325_v49 = vld [vmem:[#allocation2 + $0x8e8] sm:$0xff]  ;;  %v741_v52 = vadd.f32 %v740_v43, %v85_v36 }
  0xa1   :  { %v583_v10 = vrot.slane %v582_v2, 4  ;;  %v907_v14 = vadd.f32 %v906_v5, %v512_v1  ;;  %v450_v25 = vld [vmem:[#allocation2 + $0xcd0] sm:$0xff]  ;;  %v1067_v54 = vadd.f32 %v1066_v44, %v317_v42  ;;  %v101_v59 = vld [vmem:[#allocation2 + $0x1e8] sm:$0xff]  ;;  %v68_v43 = vld [vmem:[#allocation2 + $0xe0] sm:$0xff] }
  0xa2   :  { %v647_v16 = vadd.f32 %v646_v7, %v218_v3  ;;  %v1366_v18 = vsel %vm1362_vm0, %v1221_v9, %v1213_v63  ;;  %v971_v22 = vadd.f32 %v970_v12, %v434_v6  ;;  %v242_v29 = vld [vmem:[#allocation2 + $0x650] sm:$0xff]  ;;  %v742_v63 = vadd.f32 %v741_v52, %v93_v48  ;;  %v109_v5 = vld [vmem:[#allocation2 + $0x228] sm:$0xff] }
  0xa3   :  { %v584_v20 = vadd.f32 %v583_v10, %v582_v2  ;;  %1514 = vmatprep.mubr.f32.mxu1 %v1366_v18  ;;  %v908_v24 = vadd.f32 %v907_v14, %v520_v0  ;;  %v458_v30 = vld [vmem:[#allocation2 + $0xd10] sm:$0xff]  ;;  %v1068_v1 = vadd.f32 %v1067_v54, %v325_v49  ;;  %v341_v6 = vld [vmem:[#allocation2 + $0x968] sm:$0xff] }
  0xa4   :  { %v648_v26 = vadd.f32 %v647_v16, %v226_v11  ;;  %v972_v31 = vadd.f32 %v971_v22, %v442_v15  ;;  %v250_v40 = vld [vmem:[#allocation2 + $0x690] sm:$0xff]  ;;  %v743_v9 = vadd.f32 %v742_v63, %v101_v59  ;;  %v117_v14 = vld [vmem:[#allocation2 + $0x268] sm:$0xff] }
  0xa5   :  { %v585_v33 = vrot.slane %v584_v20, 2  ;;  %v909_v34 = vadd.f32 %v908_v24, %v528_v19  ;;  %v466_v46 = vld [vmem:[#allocation2 + $0xd50] sm:$0xff]  ;;  %v1069_v0 = vadd.f32 %v1068_v1, %v333_v60  ;;  %v349_v15 = vld [vmem:[#allocation2 + $0x9a8] sm:$0xff] }
  0xa6   :  { %v649_v35 = vadd.f32 %v648_v26, %v234_v21  ;;  %v973_v41 = vadd.f32 %v972_v31, %v450_v25  ;;  %v258_v50 = vld [vmem:[#allocation2 + $0x6d0] sm:$0xff]  ;;  %v744_v19 = vadd.f32 %v743_v9, %v109_v5  ;;  %v125_v24 = vld [vmem:[#allocation2 + $0x2a8] sm:$0xff]  ;;  %v60_v31 = vld [vmem:[#allocation2 + $0xa0] sm:$0xff] }
  0xa7   :  { %v910_v45 = vadd.f32 %v909_v34, %v536_v28  ;;  %v586_v55 = vadd.f32 %v585_v33, %v584_v20  ;;  %v474_v57 = vld [vmem:[#allocation2 + $0xd90] sm:$0xff]  ;;  %v1070_v20 = vadd.f32 %v1069_v0, %v341_v6  ;;  %v357_v25 = vld [vmem:[#allocation2 + $0x9e8] sm:$0xff] }
  0xa8   :  { %v650_v47 = vadd.f32 %v649_v35, %v242_v29  ;;  %v974_v51 = vadd.f32 %v973_v41, %v458_v30  ;;  %v266_v61 = vld [vmem:[#allocation2 + $0x710] sm:$0xff]  ;;  %v745_v27 = vadd.f32 %v744_v19, %v117_v14  ;;  %v44_v29 = vld [vmem:[#allocation2 + $0x20] sm:$0xff]  ;;  %v133_v36 = vld [vmem:[#allocation2 + $0x2e8] sm:$0xff] }
  0xa9   :  { %v911_v56 = vadd.f32 %v910_v45, %v544_v39  ;;  %v482_v3 = vld [vmem:[#allocation2 + $0xdd0] sm:$0xff]  ;;  %v587_v10 = vrot.slane %v586_v55, 1  ;;  %v1071_v28 = vadd.f32 %v1070_v20, %v349_v15  ;;  %v52_v30 = vld [vmem:[#allocation2 + $0x60] sm:$0xff]  ;;  %v365_v37 = vld [vmem:[#allocation2 + $0xa28] sm:$0xff] }
  0xaa   :  { %v651_v58 = vadd.f32 %v650_v47, %v250_v40  ;;  %v975_v62 = vadd.f32 %v974_v51, %v466_v46  ;;  %v274_v7 = vld [vmem:[#allocation2 + $0x750] sm:$0xff]  ;;  %v700_v38 = vadd.f32 %v52_v30, %v44_v29  ;;  %v746_v41 = vadd.f32 %v745_v27, %v125_v24  ;;  %v1290_v47 = vld [vmem:[#allocation5 + $0x200] sm:$0xff]  ;;  %v141_v48 = vld [vmem:[#allocation2 + $0x328] sm:$0xff] }
  0xab   :  { %v912_v2 = vrot.slane %v911_v56, 4  ;;  %v490_v12 = vld [vmem:[#allocation2 + $0xe10] sm:$0xff]  ;;  %v588_v32 = vadd.f32 %v587_v10, %v586_v55  ;;  %v1072_v42 = vadd.f32 %v1071_v28, %v357_v25  ;;  %v373_v49 = vld [vmem:[#allocation2 + $0xa68] sm:$0xff]  ;;  %v2047_v29 = vld [vmem:[#allocation5 + $0x220] sm:$0xff] }
  0xac   :  { %v652_v4 = vadd.f32 %v651_v58, %v258_v50  ;;  %v976_v8 = vadd.f32 %v975_v62, %v474_v57  ;;  %v282_v16 = vld [vmem:[#allocation2 + $0x790] sm:$0xff]  ;;  %v701_v50 = vadd.f32 %v700_v38, %v60_v31  ;;  %v1291_v52 = vld [vmem:[#allocation5 + $0x208] sm:$0xff]  ;;  %v747_v55 = vadd.f32 %v746_v41, %v133_v36  ;;  %v76_v57 = vld [vmem:[#allocation2 + $0x120] sm:$0xff] }
  0xad   :  { %v913_v11 = vadd.f32 %v912_v2, %v911_v56  ;;  %v290_v17 = vld [vmem:[#allocation2 + $0x7d0] sm:$0xff]  ;;  %v1073_v56 = vadd.f32 %v1072_v42, %v365_v37  ;;  %v1210_v59 = vmul.f32 0.00390625, %v588_v32  ;;  %v149_v62 = vld [vmem:[#allocation2 + $0x368] sm:$0xff]  ;;  %v1850_v10 = vpack.c.bf16 %v1291_v52, %v1290_v47  ;;  %v108_v47 = vld [vmem:[#allocation2 + $0x220] sm:$0xff] }
  0xae   :  { %v653_v13 = vadd.f32 %v652_v4, %v266_v61  ;;  %v977_v18 = vadd.f32 %v976_v8, %v482_v3  ;;  %v498_v22 = vld [vmem:[#allocation2 + $0xe50] sm:$0xff]  ;;  %v1309_v61 = vld [vmem:[#allocation5 + $0x298] sm:$0xff]  ;;  %v381_v63 = vld [vmem:[#allocation2 + $0xaa8] sm:$0xff]  ;;  %v702_v1 = vadd.f32 %v701_v50, %v68_v43  ;;  %v748_v5 = vadd.f32 %v747_v55, %v141_v48 }
  0xaf   :  { %v914_v21 = vrot.slane %v913_v11, 2  ;;  %v506_v34 = vld [vmem:[#allocation2 + $0xe90] sm:$0xff]  ;;  %v1074_v6 = vadd.f32 %v1073_v56, %v373_v49  ;;  %v165_v25 = vld [vmem:[#allocation2 + $0x3e8] sm:$0xff]  ;;  %v324_v52 = vld [vmem:[#allocation2 + $0x8e0] sm:$0xff] }
  0xb0   :  { %v654_v23 = vadd.f32 %v653_v13, %v274_v7  ;;  %v978_v26 = vadd.f32 %v977_v18, %v490_v12  ;;  %v514_v39 = vld [vmem:[#allocation2 + $0xed0] sm:$0xff]  ;;  %v84_v7 = vld [vmem:[#allocation2 + $0x160] sm:$0xff]  ;;  %v157_v12 = vld [vmem:[#allocation2 + $0x3a8] sm:$0xff]  ;;  %v703_v14 = vadd.f32 %v702_v1, %v76_v57  ;;  %v749_v19 = vadd.f32 %v748_v5, %v149_v62 }
  0xb1   :  { %v915_v33 = vadd.f32 %v914_v21, %v913_v11  ;;  %v522_v45 = vld [vmem:[#allocation2 + $0xf10] sm:$0xff]  ;;  %v1293_v11 = vld [vmem:[#allocation5 + $0x218] sm:$0xff]  ;;  %v389_v13 = vld [vmem:[#allocation2 + $0xae8] sm:$0xff]  ;;  %v1075_v20 = vadd.f32 %v1074_v6, %v381_v63 }
  0xb2   :  { %v655_v35 = vadd.f32 %v654_v23, %v282_v16  ;;  %v979_v40 = vadd.f32 %v978_v26, %v498_v22  ;;  %v1308_v54 = vld [vmem:[#allocation5 + $0x290] sm:$0xff]  ;;  %v1311_v18 = vld [vmem:[#allocation5 + $0x2a8] sm:$0xff]  ;;  %v92_v21 = vld [vmem:[#allocation2 + $0x1a0] sm:$0xff]  ;;  %v704_v27 = vadd.f32 %v703_v14, %v84_v7  ;;  %v750_v32 = vadd.f32 %v749_v19, %v157_v12 }
  0xb3   :  { %v916_v44 = vrot.slane %v915_v33, 1  ;;  %v530_v2 = vld [vmem:[#allocation2 + $0xf50] sm:$0xff]  ;;  %v1852_v16 = vpack.c.bf16 %v1309_v61, %v1308_v54  ;;  %v397_v26 = vld [vmem:[#allocation2 + $0xb28] sm:$0xff]  ;;  %v2053_v57 = vld [vmem:[#allocation5 + $0x238] sm:$0xff] }
  0xb4   :  { %v656_v46 = vadd.f32 %v655_v35, %v290_v17  ;;  %v980_v51 = vadd.f32 %v979_v40, %v506_v34  ;;  %v1292_v4 = vld [vmem:[#allocation5 + $0x210] sm:$0xff]  ;;  %v1310_v17 = vld [vmem:[#allocation5 + $0x2a0] sm:$0xff]  ;;  %v2049_v30 = vld [vmem:[#allocation5 + $0x228] sm:$0xff]  ;;  %v705_v41 = vadd.f32 %v704_v27, %v92_v21 }
  0xb5   :  { %v917_v58 = vadd.f32 %v916_v44, %v915_v33  ;;  %v538_v9 = vld [vmem:[#allocation2 + $0xf90] sm:$0xff]  ;;  %v173_v31 = vld [vmem:[#allocation2 + $0x428] sm:$0xff]  ;;  %v1076_v33 = vadd.f32 %v1075_v20, %v389_v13  ;;  %v100_v34 = vld [vmem:[#allocation2 + $0x1e0] sm:$0xff]  ;;  %v1854_v36 = vpack.c.bf16 %v1293_v11, %v1292_v4  ;;  %v1856_v37 = vpack.c.bf16 %v1311_v18, %v1310_v17 }
  0xb6   :  { %v657_v60 = vrot.slane %v656_v46, 4  ;;  %v981_v3 = vadd.f32 %v980_v51, %v514_v39  ;;  %v546_v23 = vld [vmem:[#allocation2 + $0xfd0] sm:$0xff]  ;;  %v300_v35 = vld [vmem:[#allocation2 + $0x820] sm:$0xff]  ;;  %v405_v38 = vld [vmem:[#allocation2 + $0xb68] sm:$0xff]  ;;  %v706_v54 = vadd.f32 %v705_v41, %v100_v34  ;;  %v1858_v62 = vpack.c.bf16 %v2049_v30, %v2047_v29 }
  0xb7   :  { %v1218_v8 = vmul.f32 0.00390625, %v917_v58  ;;  %v308_v39 = vld [vmem:[#allocation2 + $0x860] sm:$0xff]  ;;  %v1312_v43 = vld [vmem:[#allocation5 + $0x2b0] sm:$0xff]  ;;  %v1313_v44 = vld [vmem:[#allocation5 + $0x2b8] sm:$0xff] }
  0xb8   :  { %v658_v0 = vadd.f32 %v657_v60, %v656_v46  ;;  %v982_v15 = vadd.f32 %v981_v3, %v522_v45  ;;  %v316_v40 = vld [vmem:[#allocation2 + $0x8a0] sm:$0xff]  ;;  %v751_v45 = vadd.f32 %v750_v32, %v165_v25  ;;  %v1077_v46 = vadd.f32 %v1076_v33, %v397_v26  ;;  %v181_v50 = vld [vmem:[#allocation2 + $0x468] sm:$0xff]  ;;  %v2051_v56 = vld [vmem:[#allocation5 + $0x230] sm:$0xff] }
  0xb9   :  { %v1363_v22 = vsel %vm1362_vm0, %v1218_v8, %v1210_v59  ;;  %v1029_v48 = vadd.f32 %v308_v39, %v300_v35  ;;  %v413_v51 = vld [vmem:[#allocation2 + $0xba8] sm:$0xff]  ;;  %v116_v60 = vld [vmem:[#allocation2 + $0x260] sm:$0xff]  ;;  %v1860_v63 = vpack.c.bf16 %v1313_v44, %v1312_v43  ;;  %v707_v4 = vadd.f32 %v706_v54, %v108_v47  ;;  %v2061_v19 = vld [vmem:[#allocation5 + $0x310] sm:$0xff] }
  0xba   :  { %v659_v24 = vrot.slane %v658_v0, 2  ;;  %1445 = vmatmul.mubr.f32.vlgmr.msra.gmra.mrb[0].mxu0 %v1363_v22  ;;  %v983_v28 = vadd.f32 %v982_v15, %v530_v2  ;;  %v752_v58 = vadd.f32 %v751_v45, %v173_v31  ;;  %v1078_v59 = vadd.f32 %v1077_v46, %v405_v38  ;;  %v189_v1 = vld [vmem:[#allocation2 + $0x4a8] sm:$0xff]  ;;  %v332_v3 = vld [vmem:[#allocation2 + $0x920] sm:$0xff]  ;;  %v2063_v20 = vld [vmem:[#allocation5 + $0x318] sm:$0xff] }
  0xbb   :  { %1851 = vmatpush3.bf16.msra.mxu0 %v1850_v10  ;;  %v1030_v61 = vadd.f32 %v1029_v48, %v316_v40  ;;  %v421_v2 = vld [vmem:[#allocation2 + $0xbe8] sm:$0xff]  ;;  %v2057_v6 = vld [vmem:[#allocation5 + $0x300] sm:$0xff]  ;;  %v708_v17 = vadd.f32 %v707_v4, %v116_v60  ;;  %v1862_v29 = vpack.c.bf16 %v2053_v57, %v2051_v56 }
  0xbc   :  { %v984_v42 = vadd.f32 %v983_v28, %v538_v9  ;;  %1853 = vmatprep.subr.bf16.mxu0 %v1852_v16  ;;  %v660_v49 = vadd.f32 %v659_v24, %v658_v0  ;;  %v2059_v7 = vld [vmem:[#allocation5 + $0x308] sm:$0xff]  ;;  %v1314_v8 = vld [vmem:[#allocation5 + $0x2c0] sm:$0xff]  ;;  %v753_v0 = vadd.f32 %v752_v58, %v181_v50  ;;  %v1079_v10 = vadd.f32 %v1078_v59, %v413_v51  ;;  %v2071_v24 = vld [vmem:[#allocation5 + $0x2d8] sm:$0xff] }
  0xbd   :  { %v1315_v9 = vld [vmem:[#allocation5 + $0x2c8] sm:$0xff]  ;;  %v124_v11 = vld [vmem:[#allocation2 + $0x2a0] sm:$0xff]  ;;  %v1031_v12 = vadd.f32 %v1030_v61, %v324_v52  ;;  %v1881_v43 = vpack.c.bf16 %v2059_v7, %v2057_v6 }
  0xbe   :  { %v985_v55 = vadd.f32 %v984_v42, %v546_v23  ;;  %v661_v13 = vrot.slane %v660_v49, 1  ;;  %v197_v14 = vld [vmem:[#allocation2 + $0x4e8] sm:$0xff]  ;;  %v340_v16 = vld [vmem:[#allocation2 + $0x960] sm:$0xff]  ;;  %v2069_v23 = vld [vmem:[#allocation5 + $0x2d0] sm:$0xff]  ;;  %v754_v25 = vadd.f32 %v753_v0, %v189_v1  ;;  %v1080_v26 = vadd.f32 %v1079_v10, %v421_v2 }
  0xbf   :  { %1855 = vmatpush3.bf16.msra.mxu0 %v1854_v36  ;;  %v429_v15 = vld [vmem:[#allocation2 + $0xc28] sm:$0xff]  ;;  %v2065_v21 = vld [vmem:[#allocation5 + $0x240] sm:$0xff]  ;;  %v1032_v28 = vadd.f32 %v1031_v12, %v332_v3  ;;  %v1864_v30 = vpack.c.bf16 %v1315_v9, %v1314_v8  ;;  %v709_v34 = vadd.f32 %v708_v17, %v124_v11  ;;  %v2075_v36 = vld [vmem:[#allocation5 + $0x250] sm:$0xff]  ;;  %v1868_v59 = vpack.c.bf16 %v2071_v24, %v2069_v23 }
  0xc0   :  { %v986_v5 = vrot.slane %v985_v55, 4  ;;  %1857 = vmatprep.subr.bf16.mxu0 %v1856_v37  ;;  %v2067_v22 = vld [vmem:[#allocation5 + $0x248] sm:$0xff]  ;;  %v132_v27 = vld [vmem:[#allocation2 + $0x2e0] sm:$0xff]  ;;  %v2077_v37 = vld [vmem:[#allocation5 + $0x258] sm:$0xff]  ;;  %v755_v38 = vadd.f32 %v754_v25, %v197_v14  ;;  %v1081_v39 = vadd.f32 %v1080_v26, %v429_v15  ;;  %v662_v42 = vadd.f32 %v661_v13, %v660_v49 }
  0xc1   :  { %v205_v31 = vld [vmem:[#allocation2 + $0x528] sm:$0xff]  ;;  %v348_v33 = vld [vmem:[#allocation2 + $0x9a0] sm:$0xff]  ;;  %v1033_v41 = vadd.f32 %v1032_v28, %v340_v16  ;;  %v710_v47 = vadd.f32 %v709_v34, %v132_v27  ;;  %v1884_v49 = vpack.c.bf16 %v2063_v20, %v2061_v19  ;;  %v1866_v58 = vpack.c.bf16 %v2067_v22, %v2065_v21  ;;  %v47_v9 = vld [vmem:[#allocation2 + $0x38] sm:$0xff] }
  0xc2   :  { %v987_v18 = vadd.f32 %v986_v5, %v985_v55  ;;  %v437_v32 = vld [vmem:[#allocation2 + $0xc68] sm:$0xff]  ;;  %v140_v40 = vld [vmem:[#allocation2 + $0x320] sm:$0xff]  ;;  %v756_v54 = vadd.f32 %v755_v38, %v205_v31  ;;  %v55_v0 = vld [vmem:[#allocation2 + $0x78] sm:$0xff]  ;;  %v1212_v11 = vmul.f32 0.00390625, %v662_v42  ;;  %v1870_v12 = vpack.c.bf16 %v2077_v37, %v2075_v36 }
  0xc3   :  { %1859 = vmatpush3.bf16.msra.mxu0 %v1858_v62  ;;  %v213_v44 = vld [vmem:[#allocation2 + $0x568] sm:$0xff]  ;;  %v356_v46 = vld [vmem:[#allocation2 + $0x9e0] sm:$0xff]  ;;  %v1082_v55 = vadd.f32 %v1081_v39, %v437_v32  ;;  %v1034_v57 = vadd.f32 %v1033_v41, %v348_v33  ;;  %v63_v10 = vld [vmem:[#allocation2 + $0xb8] sm:$0xff]  ;;  %v812_v17 = vsel %vm811_vm1, %v47_v9, 0.0  ;;  %v813_v32 = vsel %vm811_vm1, %v55_v0, 0.0 }
  0xc4   :  { %v988_v35 = vrot.slane %v987_v18, 2  ;;  %1861 = vmatprep.subr.bf16.mxu0 %v1860_v63  ;;  %v445_v45 = vld [vmem:[#allocation2 + $0xca8] sm:$0xff]  ;;  %v2081_v50 = vld [vmem:[#allocation5 + $0x2e0] sm:$0xff]  ;;  %v711_v63 = vadd.f32 %v710_v47, %v140_v40  ;;  %v757_v4 = vadd.f32 %v756_v54, %v213_v44  ;;  %v2098_v21 = vld [vmem:[#allocation5 + $0x2f0] sm:$0xff]  ;;  %v815_v33 = vsel %vm811_vm1, %v63_v10, 0.0 }
  0xc5   :  { %v2083_v51 = vld [vmem:[#allocation5 + $0x2e8] sm:$0xff]  ;;  %v148_v56 = vld [vmem:[#allocation2 + $0x360] sm:$0xff]  ;;  %v1083_v5 = vadd.f32 %v1082_v55, %v445_v45  ;;  %v1035_v8 = vadd.f32 %v1034_v57, %v356_v46  ;;  %v71_v26 = vld [vmem:[#allocation2 + $0xf8] sm:$0xff]  ;;  %v814_v47 = vadd.f32 %v813_v32, %v812_v17 }
  0xc6   :  { %v989_v48 = vadd.f32 %v988_v35, %v987_v18  ;;  %v221_v52 = vld [vmem:[#allocation2 + $0x5a8] sm:$0xff]  ;;  %v156_v61 = vld [vmem:[#allocation2 + $0x3a0] sm:$0xff]  ;;  %v712_v16 = vadd.f32 %v711_v63, %v148_v56  ;;  %v1872_v27 = vpack.c.bf16 %v2083_v51, %v2081_v50  ;;  %v1321_v35 = vld [vmem:[#allocation5 + $0x2f8] sm:$0xff] }
  0xc7   :  { %1863 = vmatpush3.bf16.msra.mxu0 %v1862_v29  ;;  %v453_v60 = vld [vmem:[#allocation2 + $0xce8] sm:$0xff]  ;;  %v364_v62 = vld [vmem:[#allocation2 + $0xa20] sm:$0xff]  ;;  %v758_v22 = vadd.f32 %v757_v4, %v221_v52  ;;  %v79_v46 = vld [vmem:[#allocation2 + $0x138] sm:$0xff] }
  0xc8   :  { %v990_v1 = vrot.slane %v989_v48, 1  ;;  %1865 = vmatprep.subr.bf16.mxu0 %v1864_v30  ;;  %v2091_v2 = vld [vmem:[#allocation5 + $0x260] sm:$0xff]  ;;  %v2093_v3 = vld [vmem:[#allocation5 + $0x268] sm:$0xff]  ;;  %v1084_v23 = vadd.f32 %v1083_v5, %v453_v60  ;;  %v1036_v25 = vadd.f32 %v1035_v8, %v364_v62  ;;  %v713_v31 = vadd.f32 %v712_v16, %v156_v61  ;;  %v2112_v54 = vld [vmem:[#allocation5 + $0x270] sm:$0xff] }
  0xc9   :  { %v229_v13 = vld [vmem:[#allocation2 + $0x5e8] sm:$0xff]  ;;  %v372_v15 = vld [vmem:[#allocation2 + $0xa60] sm:$0xff]  ;;  %v1874_v41 = vpack.c.bf16 %v2093_v3, %v2091_v2  ;;  %v1876_v60 = vpack.c.bf16 %v1321_v35, %v2098_v21  ;;  %v816_v2 = vadd.f32 %v815_v33, %v814_v47  ;;  %v1305_v3 = vld [vmem:[#allocation5 + $0x278] sm:$0xff]  ;;  %v819_v10 = vsel %vm811_vm1, %v79_v46, 0.0 }
  0xca   :  { %v461_v14 = vld [vmem:[#allocation2 + $0xd28] sm:$0xff]  ;;  %v991_v18 = vadd.f32 %v990_v1, %v989_v48  ;;  %v164_v24 = vld [vmem:[#allocation2 + $0x3e0] sm:$0xff]  ;;  %v759_v37 = vadd.f32 %v758_v22, %v229_v13  ;;  %v1037_v40 = vadd.f32 %v1036_v25, %v372_v15  ;;  %v817_v48 = vsel %vm811_vm1, %v71_v26, 0.0  ;;  %v87_v1 = vld [vmem:[#allocation2 + $0x178] sm:$0xff] }
  0xcb   :  { %1867 = vmatpush3.bf16.msra.mxu0 %v1866_v58  ;;  %v237_v28 = vld [vmem:[#allocation2 + $0x628] sm:$0xff]  ;;  %v380_v30 = vld [vmem:[#allocation2 + $0xaa0] sm:$0xff]  ;;  %v1085_v38 = vadd.f32 %v1084_v23, %v461_v14  ;;  %v714_v45 = vadd.f32 %v713_v31, %v164_v24  ;;  %v95_v14 = vld [vmem:[#allocation2 + $0x1b8] sm:$0xff]  ;;  %v818_v15 = vadd.f32 %v817_v48, %v816_v2  ;;  %v821_v21 = vsel %vm811_vm1, %v87_v1, 0.0 }
  0xcc   :  { %v469_v29 = vld [vmem:[#allocation2 + $0xd68] sm:$0xff]  ;;  %v1220_v34 = vmul.f32 0.00390625, %v991_v18  ;;  %1869 = vmatprep.subr.bf16.mxu0 %v1868_v59  ;;  %v172_v39 = vld [vmem:[#allocation2 + $0x420] sm:$0xff]  ;;  %v760_v56 = vadd.f32 %v759_v37, %v237_v28  ;;  %v1038_v59 = vadd.f32 %v1037_v40, %v380_v30  ;;  %v2120_v16 = vld [vmem:[#allocation5 + $0x330] sm:$0xff]  ;;  %v1878_v23 = vpack.c.bf16 %v1305_v3, %v2112_v54 }
  0xcd   :  { %v245_v36 = vld [vmem:[#allocation2 + $0x668] sm:$0xff]  ;;  %v388_v44 = vld [vmem:[#allocation2 + $0xae0] sm:$0xff]  ;;  %v1086_v57 = vadd.f32 %v1085_v38, %v469_v29  ;;  %v715_v63 = vadd.f32 %v714_v45, %v172_v39  ;;  %v820_v28 = vadd.f32 %v819_v10, %v818_v15  ;;  %v1329_v29 = vld [vmem:[#allocation5 + $0x338] sm:$0xff]  ;;  %v823_v35 = vsel %vm811_vm1, %v95_v14, 0.0 }
  0xce   :  { %v477_v42 = vld [vmem:[#allocation2 + $0xda8] sm:$0xff]  ;;  %v1365_v50 = vsel %vm1362_vm0, %v1220_v34, %v1212_v11  ;;  %v2108_v51 = vld [vmem:[#allocation5 + $0x320] sm:$0xff]  ;;  %v761_v5 = vadd.f32 %v760_v56, %v245_v36  ;;  %v1039_v0 = vadd.f32 %v1038_v59, %v388_v44  ;;  %v111_v39 = vld [vmem:[#allocation2 + $0x238] sm:$0xff]  ;;  %v1890_v47 = vpack.c.bf16 %v1329_v29, %v2120_v16 }
  0xcf   :  { %v2110_v52 = vld [vmem:[#allocation5 + $0x328] sm:$0xff]  ;;  %v180_v58 = vld [vmem:[#allocation2 + $0x460] sm:$0xff]  ;;  %1515 = vmatmul.mubr.f32.vlgmr.msra.gmra.mrb[0].mxu1 %v1365_v50  ;;  %1871 = vmatpush3.bf16.msra.mxu0 %v1870_v12  ;;  %v1087_v8 = vadd.f32 %v1086_v57, %v477_v42  ;;  %v822_v40 = vadd.f32 %v821_v21, %v820_v28  ;;  %v2139_v56 = vld [vmem:[#allocation5 + $0x358] sm:$0xff] }
  0xd0   :  { %v253_v55 = vld [vmem:[#allocation2 + $0x6a8] sm:$0xff]  ;;  %v396_v62 = vld [vmem:[#allocation2 + $0xb20] sm:$0xff]  ;;  %1882 = vmatpush1.bf16.msra.mxu1 %v1881_v43  ;;  %1873 = vmatprep.subr.bf16.mxu0 %v1872_v27  ;;  %v716_v13 = vadd.f32 %v715_v63, %v180_v58  ;;  %v1887_v22 = vpack.c.bf16 %v2110_v52, %v2108_v51  ;;  %v103_v27 = vld [vmem:[#allocation2 + $0x1f8] sm:$0xff] }
  0xd1   :  { %v485_v61 = vld [vmem:[#allocation2 + $0xde8] sm:$0xff]  ;;  %v188_v9 = vld [vmem:[#allocation2 + $0x4a0] sm:$0xff]  ;;  %1883 = vmatprep.subr.bf16.mxu1 %v2002_v53  ;;  %v762_v7 = vadd.f32 %v761_v5, %v253_v55  ;;  %v1040_v18 = vadd.f32 %v1039_v0, %v396_v62  ;;  %v825_v46 = vsel %vm811_vm1, %v103_v27, 0.0  ;;  %v119_v52 = vld [vmem:[#allocation2 + $0x278] sm:$0xff]  ;;  %v824_v54 = vadd.f32 %v823_v35, %v822_v40 }
  0xd2   :  { %v261_v4 = vld [vmem:[#allocation2 + $0x6e8] sm:$0xff]  ;;  %v404_v12 = vld [vmem:[#allocation2 + $0xb60] sm:$0xff]  ;;  %v1088_v43 = vadd.f32 %v1087_v8, %v485_v61  ;;  %v717_v26 = vadd.f32 %v716_v13, %v188_v9  ;;  %v2137_v55 = vld [vmem:[#allocation5 + $0x350] sm:$0xff]  ;;  %v827_v62 = vsel %vm811_vm1, %v111_v39, 0.0 }
  0xd3   :  { %v493_v11 = vld [vmem:[#allocation2 + $0xe28] sm:$0xff]  ;;  %v196_v17 = vld [vmem:[#allocation2 + $0x4e0] sm:$0xff]  ;;  %1875 = vmatpush3.bf16.msra.mxu0 %v1874_v41  ;;  %v763_v31 = vadd.f32 %v762_v7, %v261_v4  ;;  %v1041_v34 = vadd.f32 %v1040_v18, %v404_v12  ;;  %v127_v3 = vld [vmem:[#allocation2 + $0x2b8] sm:$0xff]  ;;  %v826_v4 = vadd.f32 %v825_v46, %v824_v54  ;;  %v829_v12 = vsel %vm811_vm1, %v119_v52, 0.0 }
  0xd4   :  { %v269_v6 = vld [vmem:[#allocation2 + $0x728] sm:$0xff]  ;;  %v412_v25 = vld [vmem:[#allocation2 + $0xba0] sm:$0xff]  ;;  %1885 = vmatpush1.bf16.msra.mxu1 %v1884_v49  ;;  %1877 = vmatprep.subr.bf16.mxu0 %v1876_v60  ;;  %v1089_v32 = vadd.f32 %v1088_v43, %v493_v11  ;;  %v718_v38 = vadd.f32 %v717_v26, %v196_v17 }
  0xd5   :  { %v501_v24 = vld [vmem:[#allocation2 + $0xe68] sm:$0xff]  ;;  %v204_v33 = vld [vmem:[#allocation2 + $0x520] sm:$0xff]  ;;  %1886 = vmatprep.subr.bf16.mxu1 %v2002_v53  ;;  %v764_v49 = vadd.f32 %v763_v31, %v269_v6  ;;  %v1042_v45 = vadd.f32 %v1041_v34, %v412_v25  ;;  %v135_v6 = vld [vmem:[#allocation2 + $0x2f8] sm:$0xff]  ;;  %v828_v7 = vadd.f32 %v827_v62, %v826_v4  ;;  %v1896_v25 = vpack.c.bf16 %v2139_v56, %v2137_v55 }
  0xd6   :  { %v277_v30 = vld [vmem:[#allocation2 + $0x768] sm:$0xff]  ;;  %v420_v37 = vld [vmem:[#allocation2 + $0xbe0] sm:$0xff]  ;;  %v1090_v42 = vadd.f32 %v1089_v32, %v501_v24  ;;  %v719_v51 = vadd.f32 %v718_v38, %v204_v33  ;;  %v831_v24 = vsel %vm811_vm1, %v127_v3, 0.0  ;;  %v833_v38 = vsel %vm811_vm1, %v135_v6, 0.0  ;;  %v335_v62 = vld [vmem:[#allocation2 + $0x938] sm:$0xff] }
  0xd7   :  { %v509_v36 = vld [vmem:[#allocation2 + $0xea8] sm:$0xff]  ;;  %v2131_v41 = vld [vmem:[#allocation5 + $0x340] sm:$0xff]  ;;  %1879 = vmatpush3.bf16.msra.mxu0 %v1878_v23  ;;  %v765_v58 = vadd.f32 %v764_v49, %v277_v30  ;;  %v1043_v61 = vadd.f32 %v1042_v45, %v420_v37  ;;  %v151_v23 = vld [vmem:[#allocation2 + $0x378] sm:$0xff]  ;;  %v830_v31 = vadd.f32 %v829_v12, %v828_v7 }
  0xd8   :  { %v2133_v19 = vld [vmem:[#allocation5 + $0x348] sm:$0xff]  ;;  %v212_v44 = vld [vmem:[#allocation2 + $0x560] sm:$0xff]  ;;  %1888 = vmatpush1.bf16.msra.mxu1 %v1887_v22  ;;  %v1091_v59 = vadd.f32 %v1090_v42, %v509_v36  ;;  %v143_v22 = vld [vmem:[#allocation2 + $0x338] sm:$0xff]  ;;  %v837_v49 = vsel %vm811_vm1, %v151_v23, 0.0 }
  0xd9   :  { %v285_v20 = vld [vmem:[#allocation2 + $0x7a8] sm:$0xff]  ;;  %v428_v50 = vld [vmem:[#allocation2 + $0xc20] sm:$0xff]  ;;  %1889 = vmatprep.subr.bf16.mxu1 %v2002_v53  ;;  %v720_v2 = vadd.f32 %v719_v51, %v212_v44  ;;  %v1893_v13 = vpack.c.bf16 %v2133_v19, %v2131_v41  ;;  %v303_v30 = vld [vmem:[#allocation2 + $0x838] sm:$0xff]  ;;  %v832_v19 = vadd.f32 %v831_v24, %v830_v31 }
  0xda   :  { %v517_v48 = vld [vmem:[#allocation2 + $0xee8] sm:$0xff]  ;;  %v220_v60 = vld [vmem:[#allocation2 + $0x5a0] sm:$0xff]  ;;  %v766_v9 = vadd.f32 %v765_v58, %v285_v20  ;;  %v1044_v11 = vadd.f32 %v1043_v61, %v428_v50  ;;  %v311_v36 = vld [vmem:[#allocation2 + $0x878] sm:$0xff]  ;;  %v835_v20 = vsel %vm811_vm1, %v143_v22, 0.0  ;;  %v1140_v50 = vsel %vm811_vm1, %v303_v30, 0.0 }
  0xdb   :  { %v293_v57 = vld [vmem:[#allocation2 + $0x7e8] sm:$0xff]  ;;  %v436_v1 = vld [vmem:[#allocation2 + $0xc60] sm:$0xff]  ;;  %v1092_v0 = vadd.f32 %v1091_v59, %v517_v48  ;;  %v721_v16 = vadd.f32 %v720_v2, %v220_v60  ;;  %v319_v37 = vld [vmem:[#allocation2 + $0x8b8] sm:$0xff]  ;;  %v834_v54 = vadd.f32 %v833_v38, %v832_v19  ;;  %v1141_v55 = vsel %vm811_vm1, %v311_v36, 0.0 }
  0xdc   :  { %v525_v63 = vld [vmem:[#allocation2 + $0xf28] sm:$0xff]  ;;  %v2143_v5 = vld [vmem:[#allocation5 + $0x360] sm:$0xff]  ;;  %1891 = vmatpush1.bf16.msra.mxu1 %v1890_v47  ;;  %v767_v43 = vadd.f32 %v766_v9, %v293_v57  ;;  %v1045_v21 = vadd.f32 %v1044_v11, %v436_v1  ;;  %v159_v47 = vld [vmem:[#allocation2 + $0x3b8] sm:$0xff]  ;;  %v1143_v56 = vsel %vm811_vm1, %v319_v37, 0.0 }
  0xdd   :  { %v2145_v8 = vld [vmem:[#allocation5 + $0x368] sm:$0xff]  ;;  %v228_v10 = vld [vmem:[#allocation2 + $0x5e0] sm:$0xff]  ;;  %v1093_v17 = vadd.f32 %v1092_v0, %v525_v63  ;;  %1892 = vmatprep.subr.bf16.mxu1 %v2002_v53  ;;  %v327_v48 = vld [vmem:[#allocation2 + $0x8f8] sm:$0xff]  ;;  %v1142_v63 = vadd.f32 %v1141_v55, %v1140_v50  ;;  %v836_v4 = vadd.f32 %v835_v20, %v834_v54  ;;  %v839_v9 = vsel %vm811_vm1, %v159_v47, 0.0 }
  0xde   :  { %v533_v14 = vld [vmem:[#allocation2 + $0xf68] sm:$0xff]  ;;  %v444_v15 = vld [vmem:[#allocation2 + $0xca0] sm:$0xff]  ;;  %v1899_v26 = vpack.c.bf16 %v2145_v8, %v2143_v5  ;;  %v722_v29 = vadd.f32 %v721_v16, %v228_v10  ;;  %v768_v32 = vrot.slane %v767_v43, 4  ;;  %v167_v61 = vld [vmem:[#allocation2 + $0x3f8] sm:$0xff]  ;;  %v1145_v0 = vsel %vm811_vm1, %v327_v48, 0.0 }
  0xdf   :  { %v236_v18 = vld [vmem:[#allocation2 + $0x620] sm:$0xff]  ;;  %v541_v27 = vld [vmem:[#allocation2 + $0xfa8] sm:$0xff]  ;;  %v1094_v33 = vadd.f32 %v1093_v17, %v533_v14  ;;  %v1046_v35 = vadd.f32 %v1045_v21, %v444_v15  ;;  %v1336_v1 = vld [vmem:[#allocation5 + $0x370] sm:$0xff]  ;;  %v1144_v16 = vadd.f32 %v1143_v56, %v1142_v63  ;;  %v838_v17 = vadd.f32 %v837_v49, %v836_v4 }
  0xe0   :  { %v452_v28 = vld [vmem:[#allocation2 + $0xce0] sm:$0xff]  ;;  %v549_v39 = vld [vmem:[#allocation2 + $0xfe8] sm:$0xff]  ;;  %v723_v41 = vadd.f32 %v722_v29, %v236_v18  ;;  %1894 = vmatpush1.bf16.msra.mxu1 %v1893_v13  ;;  %v769_v42 = vadd.f32 %v768_v32, %v767_v43  ;;  %v1337_v10 = vld [vmem:[#allocation5 + $0x378] sm:$0xff]  ;;  %v841_v18 = vsel %vm811_vm1, %v167_v61, 0.0  ;;  %v1147_v21 = vsel %vm811_vm1, %v335_v62, 0.0 }
  0xe1   :  { %v244_v34 = vld [vmem:[#allocation2 + $0x660] sm:$0xff]  ;;  %v1095_v44 = vadd.f32 %v1094_v33, %v541_v27  ;;  %v1047_v46 = vadd.f32 %v1046_v35, %v452_v28  ;;  %1895 = vmatprep.subr.bf16.mxu1 %v2002_v53  ;;  %v343_v15 = vld [vmem:[#allocation2 + $0x978] sm:$0xff]  ;;  %v1146_v29 = vadd.f32 %v1145_v0, %v1144_v16  ;;  %v1902_v30 = vpack.c.bf16 %v1337_v10, %v1336_v1 }
  0xe2   :  { %v460_v40 = vld [vmem:[#allocation2 + $0xd20] sm:$0xff]  ;;  %v724_v52 = vadd.f32 %v723_v41, %v244_v34  ;;  %v770_v57 = vrot.slane %v769_v42, 2  ;;  %v175_v43 = vld [vmem:[#allocation2 + $0x438] sm:$0xff]  ;;  %v840_v34 = vadd.f32 %v839_v9, %v838_v17  ;;  %v1149_v35 = vsel %vm811_vm1, %v343_v15, 0.0 }
  0xe3   :  { %v252_v45 = vld [vmem:[#allocation2 + $0x6a0] sm:$0xff]  ;;  %v1096_v58 = vadd.f32 %v1095_v44, %v549_v39  ;;  %v1048_v60 = vadd.f32 %v1047_v46, %v460_v40  ;;  %v183_v27 = vld [vmem:[#allocation2 + $0x478] sm:$0xff]  ;;  %v1339_v39 = vld [vmem:[#allocation5 + $0x388] sm:$0xff]  ;;  %v843_v41 = vsel %vm811_vm1, %v175_v43, 0.0  ;;  %v1148_v19 = vadd.f32 %v1147_v21, %v1146_v29 }
  0xe4   :  { %v468_v51 = vld [vmem:[#allocation2 + $0xd60] sm:$0xff]  ;;  %v725_v3 = vadd.f32 %v724_v52, %v252_v45  ;;  %1897 = vmatpush1.bf16.msra.mxu1 %v1896_v25  ;;  %v771_v11 = vadd.f32 %v770_v57, %v769_v42  ;;  %v351_v28 = vld [vmem:[#allocation2 + $0x9b8] sm:$0xff]  ;;  %v842_v44 = vadd.f32 %v841_v18, %v840_v34  ;;  %v845_v45 = vsel %vm811_vm1, %v183_v27, 0.0 }
  0xe5   :  { %v260_v59 = vld [vmem:[#allocation2 + $0x6e0] sm:$0xff]  ;;  %v1097_v12 = vrot.slane %v1096_v58, 4  ;;  %v1049_v14 = vadd.f32 %v1048_v60, %v468_v51  ;;  %1898 = vmatprep.subr.bf16.mxu1 %v2002_v53  ;;  %v359_v40 = vld [vmem:[#allocation2 + $0x9f8] sm:$0xff]  ;;  %v1151_v46 = vsel %vm811_vm1, %v351_v28, 0.0  ;;  %v1150_v51 = vadd.f32 %v1149_v35, %v1148_v19  ;;  %v1340_v60 = vld [vmem:[#allocation5 + $0x390] sm:$0xff] }
  0xe6   :  { %v476_v2 = vld [vmem:[#allocation2 + $0xda0] sm:$0xff]  ;;  %v726_v7 = vadd.f32 %v725_v3, %v260_v59  ;;  %v772_v22 = vrot.slane %v771_v11, 1  ;;  %v191_v42 = vld [vmem:[#allocation2 + $0x4b8] sm:$0xff]  ;;  %v844_v56 = vadd.f32 %v843_v41, %v842_v44  ;;  %v1153_v57 = vsel %vm811_vm1, %v359_v40, 0.0 }
  0xe7   :  { %v268_v13 = vld [vmem:[#allocation2 + $0x720] sm:$0xff]  ;;  %v1098_v23 = vadd.f32 %v1097_v12, %v1096_v58  ;;  %v1050_v25 = vadd.f32 %v1049_v14, %v476_v2  ;;  %v199_v48 = vld [vmem:[#allocation2 + $0x4f8] sm:$0xff]  ;;  %v847_v63 = vsel %vm811_vm1, %v191_v42, 0.0  ;;  %v1152_v1 = vadd.f32 %v1151_v46, %v1150_v51 }
  0xe8   :  { %v484_v6 = vld [vmem:[#allocation2 + $0xde0] sm:$0xff]  ;;  %v727_v33 = vadd.f32 %v726_v7, %v268_v13  ;;  %1900 = vmatpush1.bf16.msra.mxu1 %v1899_v26  ;;  %v773_v5 = vadd.f32 %v772_v22, %v771_v11  ;;  %v367_v50 = vld [vmem:[#allocation2 + $0xa38] sm:$0xff]  ;;  %v846_v9 = vadd.f32 %v845_v45, %v844_v56  ;;  %v849_v0 = vsel %vm811_vm1, %v199_v48, 0.0  ;;  %v54_v48 = vld [vmem:[#allocation2 + $0x70] sm:$0xff] }
  0xe9   :  { %v276_v24 = vld [vmem:[#allocation2 + $0x760] sm:$0xff]  ;;  %v1099_v36 = vrot.slane %v1098_v23, 2  ;;  %v1051_v37 = vadd.f32 %v1050_v25, %v484_v6  ;;  %1901 = vmatprep.subr.bf16.mxu1 %v2002_v53  ;;  %v1341_v61 = vld [vmem:[#allocation5 + $0x398] sm:$0xff]  ;;  %v1155_v10 = vsel %vm811_vm1, %v367_v50, 0.0  ;;  %v1154_v15 = vadd.f32 %v1153_v57, %v1152_v1 }
  0xea   :  { %v284_v31 = vld [vmem:[#allocation2 + $0x7a0] sm:$0xff]  ;;  %v728_v49 = vadd.f32 %v727_v33, %v276_v24  ;;  %v375_v62 = vld [vmem:[#allocation2 + $0xa78] sm:$0xff]  ;;  %v1215_v12 = vmul.f32 0.00390625, %v773_v5  ;;  %v1908_v7 = vpack.c.bf16 %v1341_v61, %v1340_v60  ;;  %v848_v17 = vadd.f32 %v847_v63, %v846_v9  ;;  %v1343_v24 = vld [vmem:[#allocation5 + $0x3a8] sm:$0xff] }
  0xeb   :  { %v492_v32 = vld [vmem:[#allocation2 + $0xe20] sm:$0xff]  ;;  %v1100_v8 = vadd.f32 %v1099_v36, %v1098_v23  ;;  %v207_v4 = vld [vmem:[#allocation2 + $0x538] sm:$0xff]  ;;  %v1157_v18 = vsel %vm811_vm1, %v375_v62, 0.0  ;;  %v1156_v28 = vadd.f32 %v1155_v10, %v1154_v15  ;;  %v62_v61 = vld [vmem:[#allocation2 + $0xb0] sm:$0xff] }
  0xec   :  { %v1338_v38 = vld [vmem:[#allocation5 + $0x380] sm:$0xff]  ;;  %v1052_v47 = vadd.f32 %v1051_v37, %v492_v32  ;;  %v729_v54 = vadd.f32 %v728_v49, %v284_v31  ;;  %1903 = vmatpush1.bf16.msra.mxu1 %v1902_v30  ;;  %v383_v14 = vld [vmem:[#allocation2 + $0xab8] sm:$0xff]  ;;  %v851_v27 = vsel %vm811_vm1, %v207_v4, 0.0  ;;  %v850_v32 = vadd.f32 %v849_v0, %v848_v17  ;;  %v2186_v37 = vld [vmem:[#allocation5 + $0x3b0] sm:$0xff] }
  0xed   :  { %v500_v20 = vld [vmem:[#allocation2 + $0xe60] sm:$0xff]  ;;  %v1905_v55 = vpack.c.bf16 %v1339_v39, %v1338_v38  ;;  %v1101_v58 = vrot.slane %v1100_v8, 1  ;;  %1904 = vmatprep.subr.bf16.mxu1 %v2002_v53  ;;  %v215_v43 = vld [vmem:[#allocation2 + $0x578] sm:$0xff]  ;;  %v1159_v33 = vsel %vm811_vm1, %v383_v14, 0.0  ;;  %v1158_v40 = vadd.f32 %v1157_v18, %v1156_v28 }
  0xee   :  { %v292_v26 = vld [vmem:[#allocation2 + $0x7e0] sm:$0xff]  ;;  %v1053_v59 = vadd.f32 %v1052_v47, %v500_v20  ;;  %v391_v25 = vld [vmem:[#allocation2 + $0xaf8] sm:$0xff]  ;;  %v853_v39 = vsel %vm811_vm1, %v215_v43, 0.0  ;;  %v852_v42 = vadd.f32 %v851_v27, %v850_v32  ;;  %v46_v47 = vld [vmem:[#allocation2 + $0x30] sm:$0xff] }
  0xef   :  { %v508_v52 = vld [vmem:[#allocation2 + $0xea0] sm:$0xff]  ;;  %v730_v3 = vadd.f32 %v729_v54, %v292_v26  ;;  %v1102_v11 = vadd.f32 %v1101_v58, %v1100_v8  ;;  %v223_v31 = vld [vmem:[#allocation2 + $0x5b8] sm:$0xff]  ;;  %v1161_v44 = vsel %vm811_vm1, %v391_v25, 0.0  ;;  %v1160_v26 = vadd.f32 %v1159_v33, %v1158_v40  ;;  %v302_v54 = vld [vmem:[#allocation2 + $0x830] sm:$0xff] }
  0xf0   :  { %v516_v2 = vld [vmem:[#allocation2 + $0xee0] sm:$0xff]  ;;  %v1054_v13 = vadd.f32 %v1053_v59, %v508_v52  ;;  %1906 = vmatpush1.bf16.msra.mxu1 %v1905_v55  ;;  %v399_v38 = vld [vmem:[#allocation2 + $0xb38] sm:$0xff]  ;;  %v855_v8 = vsel %vm811_vm1, %v223_v31, 0.0  ;;  %v854_v51 = vadd.f32 %v853_v39, %v852_v42  ;;  %v310_v55 = vld [vmem:[#allocation2 + $0x870] sm:$0xff]  ;;  %v774_v4 = vadd.f32 %v54_v48, %v46_v47 }
  0xf1   :  { %v524_v16 = vld [vmem:[#allocation2 + $0xf20] sm:$0xff]  ;;  %v731_v6 = vrot.slane %v730_v3, 4  ;;  %v1223_v21 = vmul.f32 0.00390625, %v1102_v11  ;;  %1907 = vmatprep.subr.bf16.mxu1 %v2002_v53  ;;  %v1345_v19 = vld [vmem:[#allocation5 + $0x3b8] sm:$0xff]  ;;  %v1163_v52 = vsel %vm811_vm1, %v399_v38, 0.0  ;;  %v1162_v60 = vadd.f32 %v1161_v44, %v1160_v26  ;;  %v342_v39 = vld [vmem:[#allocation2 + $0x970] sm:$0xff] }
  0xf2   :  { %v1055_v22 = vadd.f32 %v1054_v13, %v516_v2  ;;  %v1342_v23 = vld [vmem:[#allocation5 + $0x3a0] sm:$0xff]  ;;  %v231_v20 = vld [vmem:[#allocation2 + $0x5f8] sm:$0xff]  ;;  %v1914_v57 = vpack.c.bf16 %v1345_v19, %v2186_v37  ;;  %v856_v63 = vadd.f32 %v855_v8, %v854_v51  ;;  %v70_v13 = vld [vmem:[#allocation2 + $0xf0] sm:$0xff]  ;;  %v1103_v14 = vadd.f32 %v310_v55, %v302_v54 }
  0xf3   :  { %v532_v29 = vld [vmem:[#allocation2 + $0xf60] sm:$0xff]  ;;  %v732_v30 = vadd.f32 %v731_v6, %v730_v3  ;;  %v1368_v34 = vsel %vm1362_vm0, %v1223_v21, %v1215_v12  ;;  %v1911_v41 = vpack.c.bf16 %v1343_v24, %v1342_v23  ;;  %v239_v49 = vld [vmem:[#allocation2 + $0x638] sm:$0xff]  ;;  %v857_v59 = vsel %vm811_vm1, %v231_v20, 0.0  ;;  %v318_v3 = vld [vmem:[#allocation2 + $0x8b0] sm:$0xff] }
  0xf4   :  { %v540_v35 = vld [vmem:[#allocation2 + $0xfa0] sm:$0xff]  ;;  %v1056_v36 = vadd.f32 %v1055_v22, %v524_v16  ;;  %1584 = vmatprep.mubr.f32.mxu0 %v1368_v34  ;;  %1909 = vmatpush1.bf16.msra.mxu1 %v1908_v7  ;;  %v407_v5 = vld [vmem:[#allocation2 + $0xb78] sm:$0xff]  ;;  %v859_v1 = vsel %vm811_vm1, %v239_v49, 0.0  ;;  %v1164_v12 = vadd.f32 %v1163_v52, %v1162_v60  ;;  %v858_v15 = vadd.f32 %v857_v59, %v856_v63  ;;  %v326_v6 = vld [vmem:[#allocation2 + $0x8f0] sm:$0xff] }
  0xf5   :  { %v733_v45 = vrot.slane %v732_v30, 2  ;;  %v548_v50 = vld [vmem:[#allocation2 + $0xfe0] sm:$0xff]  ;;  %1910 = vmatprep.subr.bf16.mxu1 %v2002_v53  ;;  %v415_v58 = vld [vmem:[#allocation2 + $0xbb8] sm:$0xff]  ;;  %v1165_v2 = vsel %vm811_vm1, %v407_v5, 0.0  ;;  %v775_v7 = vadd.f32 %v774_v4, %v62_v61  ;;  %v78_v22 = vld [vmem:[#allocation2 + $0x130] sm:$0xff]  ;;  %v1104_v23 = vadd.f32 %v1103_v14, %v318_v3 }
  0xf6   :  { %v1057_v46 = vadd.f32 %v1056_v36, %v532_v29  ;;  %v247_v62 = vld [vmem:[#allocation2 + $0x678] sm:$0xff]  ;;  %v1167_v16 = vsel %vm811_vm1, %v415_v58, 0.0  ;;  %v1166_v21 = vadd.f32 %v1165_v2, %v1164_v12  ;;  %v860_v25 = vadd.f32 %v859_v1, %v858_v15  ;;  %v334_v29 = vld [vmem:[#allocation2 + $0x930] sm:$0xff] }
  0xf7   :  { %v734_v9 = vadd.f32 %v733_v45, %v732_v30  ;;  %v255_v10 = vld [vmem:[#allocation2 + $0x6b8] sm:$0xff]  ;;  %v861_v18 = vsel %vm811_vm1, %v247_v62, 0.0  ;;  %v1105_v36 = vadd.f32 %v1104_v23, %v326_v6  ;;  %v94_v42 = vld [vmem:[#allocation2 + $0x1b0] sm:$0xff] }
  0xf8   :  { %v1058_v56 = vadd.f32 %v1057_v46, %v540_v35  ;;  %1912 = vmatpush1.bf16.msra.mxu1 %v1911_v41  ;;  %v423_v11 = vld [vmem:[#allocation2 + $0xbf8] sm:$0xff]  ;;  %v863_v27 = vsel %vm811_vm1, %v255_v10, 0.0  ;;  %v1168_v34 = vadd.f32 %v1167_v16, %v1166_v21  ;;  %v86_v35 = vld [vmem:[#allocation2 + $0x170] sm:$0xff]  ;;  %v862_v37 = vadd.f32 %v861_v18, %v860_v25 }
  0xf9   :  { %1913 = vmatprep.subr.bf16.mxu1 %v2002_v53  ;;  %v431_v17 = vld [vmem:[#allocation2 + $0xc38] sm:$0xff]  ;;  %v1169_v28 = vsel %vm811_vm1, %v423_v11, 0.0  ;;  %v776_v53 = vadd.f32 %v775_v7, %v70_v13  ;;  %v735_v30 = vrot.slane %v734_v9, 1  ;;  %v1106_v44 = vadd.f32 %v1105_v36, %v334_v29  ;;  %v350_v8 = vld [vmem:[#allocation2 + $0x9b0] sm:$0xff] }
  0xfa   :  { %v1059_v0 = vadd.f32 %v1058_v56, %v548_v50  ;;  %v263_v24 = vld [vmem:[#allocation2 + $0x6f8] sm:$0xff]  ;;  %v1171_v38 = vsel %vm811_vm1, %v431_v17, 0.0  ;;  %v1170_v49 = vadd.f32 %v1169_v28, %v1168_v34  ;;  %v864_v45 = vadd.f32 %v863_v27, %v862_v37  ;;  %v102_v54 = vld [vmem:[#allocation2 + $0x1f0] sm:$0xff] }
  0xfb   :  { %v271_v32 = vld [vmem:[#allocation2 + $0x738] sm:$0xff]  ;;  %v777_v40 = vadd.f32 %v776_v53, %v78_v22  ;;  %v865_v20 = vsel %vm811_vm1, %v263_v24, 0.0  ;;  %v736_v47 = vadd.f32 %v735_v30, %v734_v9  ;;  %v1107_v55 = vadd.f32 %v1106_v44, %v342_v39  ;;  %v358_v58 = vld [vmem:[#allocation2 + $0x9f0] sm:$0xff] }
  0xfc   :  { %v1060_v43 = vrot.slane %v1059_v0, 4  ;;  %1915 = vmatpush1.bf16.msra.mxu1 %v1914_v57  ;;  %v439_v33 = vld [vmem:[#allocation2 + $0xc78] sm:$0xff]  ;;  %v867_v46 = vsel %vm811_vm1, %v271_v32, 0.0  ;;  %v1172_v52 = vadd.f32 %v1171_v38, %v1170_v49  ;;  %v866_v56 = vadd.f32 %v865_v20, %v864_v45  ;;  %v110_v63 = vld [vmem:[#allocation2 + $0x230] sm:$0xff] }
  0xfd   :  { %v447_v19 = vld [vmem:[#allocation2 + $0xcb8] sm:$0xff]  ;;  %v1173_v5 = vsel %vm811_vm1, %v439_v33, 0.0  ;;  %v778_v26 = vadd.f32 %v777_v40, %v86_v35  ;;  %v1108_v1 = vadd.f32 %v1107_v55, %v350_v8  ;;  %v366_v9 = vld [vmem:[#allocation2 + $0xa30] sm:$0xff]  ;;  %v1214_v11 = vmul.f32 0.00390625, %v736_v47 }
  0xfe   :  { %v1061_v31 = vadd.f32 %v1060_v43, %v1059_v0  ;;  %v279_v50 = vld [vmem:[#allocation2 + $0x778] sm:$0xff]  ;;  %v1175_v57 = vsel %vm811_vm1, %v447_v19, 0.0  ;;  %v1174_v62 = vadd.f32 %v1173_v5, %v1172_v52  ;;  %v868_v2 = vadd.f32 %v867_v46, %v866_v56  ;;  %v118_v15 = vld [vmem:[#allocation2 + $0x270] sm:$0xff] }
  0xff   :  { %v455_v51 = vld [vmem:[#allocation2 + $0xcf8] sm:$0xff]  ;;  %v779_v59 = vadd.f32 %v778_v26, %v94_v42  ;;  %v869_v3 = vsel %vm811_vm1, %v279_v50, 0.0  ;;  %v1109_v16 = vadd.f32 %v1108_v1, %v358_v58  ;;  %v374_v7 = vld [vmem:[#allocation2 + $0xa70] sm:$0xff] }
 0x100   :  { %v1062_v41 = vrot.slane %v1061_v31, 2  ;;  %v463_v61 = vld [vmem:[#allocation2 + $0xd38] sm:$0xff]  ;;  %v1177_v4 = vsel %vm811_vm1, %v455_v51, 0.0  ;;  %v1176_v14 = vadd.f32 %v1175_v57, %v1174_v62  ;;  %v870_v21 = vadd.f32 %v869_v3, %v868_v2  ;;  %v126_v23 = vld [vmem:[#allocation2 + $0x2b0] sm:$0xff] }
 0x101   :  { %v780_v0 = vadd.f32 %v779_v59, %v102_v54  ;;  %v287_v12 = vld [vmem:[#allocation2 + $0x7b8] sm:$0xff]  ;;  %v1179_v6 = vsel %vm811_vm1, %v463_v61, 0.0  ;;  %v1110_v24 = vadd.f32 %v1109_v16, %v366_v9  ;;  %v382_v28 = vld [vmem:[#allocation2 + $0xab0] sm:$0xff] }
 0x102   :  { %v1063_v48 = vadd.f32 %v1062_v41, %v1061_v31  ;;  %v471_v13 = vld [vmem:[#allocation2 + $0xd78] sm:$0xff]  ;;  %v1178_v22 = vadd.f32 %v1177_v4, %v1176_v14  ;;  %v871_v25 = vsel %vm811_vm1, %v287_v12, 0.0  ;;  %v134_v33 = vld [vmem:[#allocation2 + $0x2f0] sm:$0xff] }
 0x103   :  { %v781_v43 = vadd.f32 %v780_v0, %v110_v63  ;;  %v479_v18 = vld [vmem:[#allocation2 + $0xdb8] sm:$0xff]  ;;  %v1181_v27 = vsel %vm811_vm1, %v471_v13, 0.0  ;;  %v1111_v34 = vadd.f32 %v1110_v24, %v374_v7  ;;  %v390_v36 = vld [vmem:[#allocation2 + $0xaf0] sm:$0xff]  ;;  %v872_v39 = vadd.f32 %v871_v25, %v870_v21 }
 0x104   :  { %v1064_v60 = vrot.slane %v1063_v48, 1  ;;  %v295_v30 = vld [vmem:[#allocation2 + $0x7f8] sm:$0xff]  ;;  %v1180_v32 = vadd.f32 %v1179_v6, %v1178_v22  ;;  %v1183_v35 = vsel %vm811_vm1, %v479_v18, 0.0  ;;  %v142_v41 = vld [vmem:[#allocation2 + $0x330] sm:$0xff] }
 0x105   :  { %v782_v29 = vadd.f32 %v781_v43, %v118_v15  ;;  %v487_v31 = vld [vmem:[#allocation2 + $0xdf8] sm:$0xff]  ;;  %v1112_v19 = vadd.f32 %v1111_v34, %v382_v28  ;;  %v873_v20 = vsel %vm811_vm1, %v295_v30, 0.0  ;;  %v398_v42 = vld [vmem:[#allocation2 + $0xb30] sm:$0xff] }
 0x106   :  { %v1065_v10 = vadd.f32 %v1064_v60, %v1063_v48  ;;  %v495_v38 = vld [vmem:[#allocation2 + $0xe38] sm:$0xff]  ;;  %v1182_v40 = vadd.f32 %v1181_v27, %v1180_v32  ;;  %v1185_v49 = vsel %vm811_vm1, %v487_v31, 0.0  ;;  %v150_v5 = vld [vmem:[#allocation2 + $0x370] sm:$0xff]  ;;  %v874_v51 = vadd.f32 %v873_v20, %v872_v39 }
 0x107   :  { %v783_v37 = vadd.f32 %v782_v29, %v126_v23  ;;  %v503_v45 = vld [vmem:[#allocation2 + $0xe78] sm:$0xff]  ;;  %v1113_v8 = vadd.f32 %v1112_v19, %v390_v36  ;;  %v1187_v26 = vsel %vm811_vm1, %v495_v38, 0.0  ;;  %v406_v47 = vld [vmem:[#allocation2 + $0xb70] sm:$0xff] }
 0x108   :  { %v1222_v17 = vmul.f32 0.00390625, %v1065_v10  ;;  %v1184_v46 = vadd.f32 %v1183_v35, %v1182_v40  ;;  %v511_v50 = vld [vmem:[#allocation2 + $0xeb8] sm:$0xff]  ;;  %v158_v54 = vld [vmem:[#allocation2 + $0x3b0] sm:$0xff]  ;;  %v1189_v56 = vsel %vm811_vm1, %v503_v45, 0.0  ;;  %v875_v4 = vrot.slane %v874_v51, 4 }
 0x109   :  { %v784_v44 = vadd.f32 %v783_v37, %v134_v33  ;;  %v1114_v55 = vadd.f32 %v1113_v8, %v398_v42  ;;  %v414_v57 = vld [vmem:[#allocation2 + $0xbb0] sm:$0xff]  ;;  %v519_v59 = vld [vmem:[#allocation2 + $0xef8] sm:$0xff]  ;;  %v1191_v63 = vsel %vm811_vm1, %v511_v50, 0.0 }
 0x10a   :  { %v1367_v53 = vsel %vm1362_vm0, %v1222_v17, %v1214_v11  ;;  %v1186_v52 = vadd.f32 %v1185_v49, %v1184_v46  ;;  %v166_v61 = vld [vmem:[#allocation2 + $0x3f0] sm:$0xff]  ;;  %v527_v3 = vld [vmem:[#allocation2 + $0xf38] sm:$0xff]  ;;  %v1193_v11 = vsel %vm811_vm1, %v519_v59, 0.0  ;;  %v876_v21 = vadd.f32 %v875_v4, %v874_v51 }
 0x10b   :  { %1585 = vmatmul.mubr.f32.vlgmr.msra.gmra.mrb[2].mxu0 %v1367_v53  ;;  %v785_v48 = vadd.f32 %v784_v44, %v142_v41  ;;  %v1115_v62 = vadd.f32 %v1114_v55, %v406_v47  ;;  %v422_v1 = vld [vmem:[#allocation2 + $0xbf0] sm:$0xff]  ;;  %v535_v14 = vld [vmem:[#allocation2 + $0xf78] sm:$0xff]  ;;  %v1195_v7 = vsel %vm811_vm1, %v527_v3, 0.0 }
 0x10c   :  { %v1188_v60 = vadd.f32 %v1187_v26, %v1186_v52  ;;  %v174_v0 = vld [vmem:[#allocation2 + $0x430] sm:$0xff]  ;;  %v543_v18 = vld [vmem:[#allocation2 + $0xfb8] sm:$0xff]  ;;  %v1197_v25 = vsel %vm811_vm1, %v535_v14, 0.0  ;;  %v877_v35 = vrot.slane %v876_v21, 2 }
 0x10d   :  { %v786_v58 = vadd.f32 %v785_v48, %v150_v5  ;;  %v1116_v10 = vadd.f32 %v1115_v62, %v414_v57  ;;  %v430_v12 = vld [vmem:[#allocation2 + $0xc30] sm:$0xff]  ;;  %v551_v29 = vld [vmem:[#allocation2 + $0xff8] sm:$0xff]  ;;  %v1199_v32 = vsel %vm811_vm1, %v543_v18, 0.0 }
 0x10e   :  { %v1190_v9 = vadd.f32 %v1189_v56, %v1188_v60  ;;  %v182_v16 = vld [vmem:[#allocation2 + $0x470] sm:$0xff]  ;;  %v1201_v39 = vsel %vm811_vm1, %v551_v29, 0.0  ;;  %v878_v45 = vadd.f32 %v877_v35, %v876_v21 }
 0x10f   :  { %v787_v2 = vadd.f32 %v786_v58, %v158_v54  ;;  %v1117_v6 = vadd.f32 %v1116_v10, %v422_v1  ;;  %v438_v43 = vld [vmem:[#allocation2 + $0xc70] sm:$0xff] }
 0x110   :  { %v1192_v15 = vadd.f32 %v1191_v63, %v1190_v9  ;;  %v190_v23 = vld [vmem:[#allocation2 + $0x4b0] sm:$0xff]  ;;  %v879_v55 = vrot.slane %v878_v45, 1 }
 0x111   :  { %v788_v13 = vadd.f32 %v787_v2, %v166_v61  ;;  %v1118_v24 = vadd.f32 %v1117_v6, %v430_v12  ;;  %v446_v27 = vld [vmem:[#allocation2 + $0xcb0] sm:$0xff] }
 0x112   :  { %v1194_v22 = vadd.f32 %v1193_v11, %v1192_v15  ;;  %v198_v30 = vld [vmem:[#allocation2 + $0x4f0] sm:$0xff]  ;;  %v880_v3 = vadd.f32 %v879_v55, %v878_v45 }
 0x113   :  { %v789_v17 = vadd.f32 %v788_v13, %v174_v0  ;;  %v1119_v31 = vadd.f32 %v1118_v24, %v438_v43  ;;  %v454_v33 = vld [vmem:[#allocation2 + $0xcf0] sm:$0xff] }
 0x114   :  { %v1196_v53 = vadd.f32 %v1195_v7, %v1194_v22  ;;  %v206_v37 = vld [vmem:[#allocation2 + $0x530] sm:$0xff]  ;;  %v1217_v7 = vmul.f32 0.00390625, %v880_v3 }
 0x115   :  { %v790_v28 = vadd.f32 %v789_v17, %v182_v16  ;;  %v1120_v38 = vadd.f32 %v1119_v31, %v446_v27  ;;  %v462_v40 = vld [vmem:[#allocation2 + $0xd30] sm:$0xff] }
 0x116   :  { %v1198_v36 = vadd.f32 %v1197_v25, %v1196_v53  ;;  %v214_v20 = vld [vmem:[#allocation2 + $0x570] sm:$0xff] }
 0x117   :  { %v791_v34 = vadd.f32 %v790_v28, %v190_v23  ;;  %v1121_v49 = vadd.f32 %v1120_v38, %v454_v33  ;;  %v470_v42 = vld [vmem:[#allocation2 + $0xd70] sm:$0xff] }
 0x118   :  { %v1200_v19 = vadd.f32 %v1199_v32, %v1198_v36  ;;  %v222_v5 = vld [vmem:[#allocation2 + $0x5b0] sm:$0xff] }
 0x119   :  { %v792_v41 = vadd.f32 %v791_v34, %v198_v30  ;;  %v1122_v8 = vadd.f32 %v1121_v49, %v462_v40  ;;  %v478_v26 = vld [vmem:[#allocation2 + $0xdb0] sm:$0xff] }
 0x11a   :  { %v1202_v46 = vadd.f32 %v1201_v39, %v1200_v19  ;;  %v230_v50 = vld [vmem:[#allocation2 + $0x5f0] sm:$0xff] }
 0x11b   :  { %v793_v44 = vadd.f32 %v792_v41, %v206_v37  ;;  %v1123_v51 = vadd.f32 %v1122_v8, %v470_v42  ;;  %v486_v52 = vld [vmem:[#allocation2 + $0xdf0] sm:$0xff] }
 0x11c   :  { %v1203_v48 = vrot.slane %v1202_v46, 4  ;;  %v238_v57 = vld [vmem:[#allocation2 + $0x630] sm:$0xff] }
 0x11d   :  { %v794_v47 = vadd.f32 %v793_v44, %v214_v20  ;;  %v1124_v58 = vadd.f32 %v1123_v51, %v478_v26  ;;  %v494_v59 = vld [vmem:[#allocation2 + $0xe30] sm:$0xff] }
 0x11e   :  { %v1204_v56 = vadd.f32 %v1203_v48, %v1202_v46  ;;  %v246_v62 = vld [vmem:[#allocation2 + $0x670] sm:$0xff] }
 0x11f   :  { %v795_v54 = vadd.f32 %v794_v47, %v222_v5  ;;  %v1125_v63 = vadd.f32 %v1124_v58, %v486_v52  ;;  %v502_v1 = vld [vmem:[#allocation2 + $0xe70] sm:$0xff] }
 0x120   :  { %v1205_v61 = vrot.slane %v1204_v56, 2  ;;  %v254_v9 = vld [vmem:[#allocation2 + $0x6b0] sm:$0xff] }
 0x121   :  { %v796_v60 = vadd.f32 %v795_v54, %v230_v50  ;;  %v1126_v0 = vadd.f32 %v1125_v63, %v494_v59  ;;  %v510_v10 = vld [vmem:[#allocation2 + $0xeb0] sm:$0xff] }
 0x122   :  { %v1206_v4 = vadd.f32 %v1205_v61, %v1204_v56  ;;  %v262_v13 = vld [vmem:[#allocation2 + $0x6f0] sm:$0xff] }
 0x123   :  { %v797_v2 = vadd.f32 %v796_v60, %v238_v57  ;;  %v1127_v14 = vadd.f32 %v1126_v0, %v502_v1  ;;  %v518_v15 = vld [vmem:[#allocation2 + $0xef0] sm:$0xff] }
 0x124   :  { %v1207_v12 = vrot.slane %v1206_v4, 1  ;;  %v270_v43 = vld [vmem:[#allocation2 + $0x730] sm:$0xff] }
 0x125   :  { %v798_v11 = vadd.f32 %v797_v2, %v246_v62  ;;  %v1128_v17 = vadd.f32 %v1127_v14, %v510_v10  ;;  %v526_v18 = vld [vmem:[#allocation2 + $0xf30] sm:$0xff] }
 0x126   :  { %v1208_v6 = vadd.f32 %v1207_v12, %v1206_v4  ;;  %v278_v23 = vld [vmem:[#allocation2 + $0x770] sm:$0xff] }
 0x127   :  { %v799_v16 = vadd.f32 %v798_v11, %v254_v9  ;;  %v1129_v24 = vadd.f32 %v1128_v17, %v518_v15  ;;  %v534_v25 = vld [vmem:[#allocation2 + $0xf70] sm:$0xff] }
 0x128   :  { %v1225_v22 = vmul.f32 0.00390625, %v1208_v6  ;;  %v286_v29 = vld [vmem:[#allocation2 + $0x7b0] sm:$0xff] }
 0x129   :  { %v800_v21 = vadd.f32 %v799_v16, %v262_v13  ;;  %v1130_v53 = vadd.f32 %v1129_v24, %v526_v18  ;;  %v542_v30 = vld [vmem:[#allocation2 + $0xfb0] sm:$0xff] }
 0x12a   :  { %v1370_v28 = vsel %vm1362_vm0, %v1225_v22, %v1217_v7  ;;  %v294_v32 = vld [vmem:[#allocation2 + $0x7f0] sm:$0xff] }
 0x12b   :  { %v801_v27 = vadd.f32 %v800_v21, %v270_v43  ;;  %1678 = vmatprep.mubr.msk.f32.mxu1 %vm811_vm1, %v1370_v28  ;;  %v1131_v33 = vadd.f32 %v1130_v53, %v534_v25  ;;  %v550_v34 = vld [vmem:[#allocation2 + $0xff0] sm:$0xff] }
 0x12d   :  { %v802_v31 = vadd.f32 %v801_v27, %v278_v23  ;;  %v1132_v36 = vadd.f32 %v1131_v33, %v542_v30 }
 0x12f   :  { %v803_v35 = vadd.f32 %v802_v31, %v286_v29  ;;  %v1133_v38 = vadd.f32 %v1132_v36, %v550_v34 }
 0x131   :  { %v804_v37 = vadd.f32 %v803_v35, %v294_v32  ;;  %v1134_v40 = vrot.slane %v1133_v38, 4 }
 0x133   :  { %v805_v39 = vrot.slane %v804_v37, 4  ;;  %v1135_v19 = vadd.f32 %v1134_v40, %v1133_v38 }
 0x135   :  { %v806_v41 = vadd.f32 %v805_v39, %v804_v37  ;;  %v1136_v49 = vrot.slane %v1135_v19, 2 }
 0x137   :  { %v807_v20 = vrot.slane %v806_v41, 2  ;;  %v1137_v44 = vadd.f32 %v1136_v49, %v1135_v19 }
 0x139   :  { %v808_v42 = vadd.f32 %v807_v20, %v806_v41  ;;  %v1138_v46 = vrot.slane %v1137_v44, 1 }
 0x13b   :  { %v809_v45 = vrot.slane %v808_v42, 1  ;;  %v1139_v8 = vadd.f32 %v1138_v46, %v1137_v44 }
 0x13d   :  { %v810_v5 = vadd.f32 %v809_v45, %v808_v42  ;;  %v1224_v47 = vmul.f32 0.00390625, %v1139_v8 }
 0x13f   :  { %v1216_v26 = vmul.f32 0.00390625, %v810_v5 }
 0x141   :  { %v1369_v48 = vsel %vm1362_vm0, %v1224_v47, %v1216_v26 }
 0x142   :  { %1655 = vmatmul.mubr.f32.vlgmr.msra.gmra.mrb[2].mxu1 %v1369_v48 }
 0x18d   :  { %v1711_v50 = vpop.f32.mrb[0].mxu0 }
 0x18e   :  { %v1712_v51 = vpop.f32.mrb[1].mxu0 }
 0x18f   :  { %v1713_v52 = vadd.f32 %v1712_v51, %v1711_v50 }
 0x1a2   :  { %v1746_v54 = vpop.f32.mrb[0].mxu1 }
 0x1a3   :  { %v1747_v55 = vpop.f32.mrb[1].mxu1 }
 0x1a4   :  { %v1748_v56 = vadd.f32 %v1747_v55, %v1746_v54 }
 0x1a6   :  { %v1517_v57 = vadd.f32 %v1748_v56, %v1713_v52 }
 0x1de   :  { %v1781_v58 = vpop.f32.mrb[2].mxu0 }
 0x1df   :  { %v1782_v59 = vpop.f32.mrb[3].mxu0 }
 0x1e0   :  { %v1783_v60 = vadd.f32 %v1782_v59, %v1781_v58 }
 0x1e2   :  { %v1587_v61 = vadd.f32 %v1783_v60, %v1517_v57 }
 0x215   :  { %v1656_v62 = vpop.f32.mrb[2].mxu1 }
 0x216   :  { %v1657_v63 = vadd.f32 %v1656_v62, %v1587_v61  ;;  %v1658_v1 = vpop.f32.mrb[3].mxu1 }
 0x218   :  { %1661 = vst.msk [vmem:[#allocation7] sm:$0x3] %vm1660_vm2, %v1657_v63 }
 0x219   :  { %1979 = shalt.err (!%p1976_p6)
}
 0x21a   :  { %s1980_s12 = scalar_lea.hbm %s2241_s2, 32 }
 0x21b   :  { %p1981_p7 = scmp.ne.s32.totalorder %s2241_s2, %s1980_s12  ;;  %p1984_p8 = scmp.lt.u32.totalorder %s1980_s12, %s2241_s2 }
 0x21d   :  { %p1986_p9 = pnand %p1984_p8, %p1981_p7 }
 0x21f   :  { %1989 = shalt.err (!%p1986_p9)
}
 0x220   :  { %1671 = dma.vmem_to_hbm [thread:$0]  %s1669_s8, 32, %s2241_s2, [#allocation4]  }
 0x221   :  { %1994 = dma.done.wait [#allocation4], 32  }
 0x222   :  { %1995 = vsyncadd [#allocation4], 4294967264 }
 0x223   :  { %1675 = vsyncpa [#allocation3], 1 }
 0x224   :  { %1676 = vsyncpa [#allocation6], 1 }
 0x225   :  { %1677 = vsyncpa [#allocation4], 1 }

</bundles_post_ra>
